<compile_context>
chip_gen: v6e
topology: v6e:2x2x1
jax: 0.10.0
libtpu: 0.0.40
codegen_flags: <defaults>
</compile_context>

<pallas_src>
import jax
import jax.numpy as jnp
from jax import lax
from jax.experimental import pallas as pl
from jax.experimental.pallas import tpu as pltpu


def _round_up(v, m):
    return (v + m - 1) // m * m


def _edge_chunk(i, j, lo_ref, nck_ref):
    """Block index of the j-th edge chunk of node tile i (clamped so skipped steps
    re-present the previous block and trigger no new DMA)."""
    last = jnp.maximum(nck_ref[i] - 1, 0)
    return lo_ref[i] + jnp.minimum(j, last)


def _pna_kernel(lo_ref, nck_ref,                           # scalar prefetch (SMEM)
                scal_ref, idxl_ref, idxc_ref, x_ref,       # inputs
                wid_ref, wamp_ref, watt_ref, b_ref,
                o_ref,                                      # output
                sum_ref, sq_ref, cnt_ref, min_ref, max_ref):  # VMEM scratch
    i = pl.program_id(0)                 # node tile   ("parallel")
    j = pl.program_id(1)                 # edge chunk  ("arbitrary" / reduction)
    TN, Fp = min_ref.shape
    TE = x_ref.shape[0]

    # ---- init accumulators at the first edge chunk ------------------------------
    @pl.when(j == 0)
    def _init():
        sum_ref[...] = jnp.zeros(sum_ref.shape, sum_ref.dtype)
        sq_ref[...] = jnp.zeros(sq_ref.shape, sq_ref.dtype)
        cnt_ref[...] = jnp.zeros(cnt_ref.shape, cnt_ref.dtype)
        min_ref[...] = jnp.full(min_ref.shape, jnp.inf, min_ref.dtype)
        max_ref[...] = jnp.full(max_ref.shape, -jnp.inf, max_ref.dtype)

    # ---- accumulate only over chunks that actually hold this tile's edges -------
    @pl.when(j < nck_ref[i])
    def _accumulate():
        x = x_ref[...]                                   # (TE, Fp) f32 messages
        base = i * TN
        idx_rel_row = idxl_ref[0] - base                 # (1, TE)  lane layout
        idx_rel_col = idxc_ref[...] - base               # (TE, 1)  sublane layout

        # one-hot built already transposed as (node, edge): no XLU transpose.
        node_iota = lax.broadcasted_iota(jnp.int32, (TN, TE), 0)
        onehot = (node_iota == idx_rel_row).astype(jnp.float32)      # (TN, TE)

        # moments: two accumulating f32 MXU dots (exactness keeps PyG std-mask
        # parity); the count rides the otherwise idle XLU lane-reduce slot.
        sum_ref[...] += jnp.dot(onehot, x, preferred_element_type=jnp.float32)
        sq_ref[...] += jnp.dot(onehot, x * x, preferred_element_type=jnp.float32)
        cnt_ref[...] += jnp.sum(onehot, axis=1, keepdims=True)

        # min / max: 8-node sublane slabs, lane-dense (Fp % 128 == 0) stores.
        def _slab(s, carry):
            row0 = pl.multiple_of(s * 8, 8)
            mins, maxs = [], []
            for r in range(8):            # independent reduces -> LLO interleaves
                m = idx_rel_col == (s * 8 + r)
                mins.append(jnp.min(jnp.where(m, x, jnp.inf), axis=0, keepdims=True))
                maxs.append(jnp.max(jnp.where(m, x, -jnp.inf), axis=0, keepdims=True))
            sl = pl.ds(row0, 8)
            min_ref[sl, :] = jnp.minimum(min_ref[sl, :], jnp.concatenate(mins, axis=0))
            max_ref[sl, :] = jnp.maximum(max_ref[sl, :], jnp.concatenate(maxs, axis=0))
            return carry

        lax.fori_loop(0, TN // 8, _slab, 0)

    # ---- finalize at the last edge chunk: scalers + split-weight Linear ---------
    @pl.when(j == pl.num_programs(1) - 1)
    def _finalize():
        cnt = cnt_ref[...]                               # (TN, 1)
        cnt_c = jnp.maximum(cnt, 1.0)                    # deg.clamp_(1)
        inv_cnt = 1.0 / cnt_c                            # exact -> PyG std-mask parity
        mean = sum_ref[...] * inv_cnt
        var = sq_ref[...] * inv_cnt - mean * mean
        std = jnp.sqrt(jnp.maximum(var, 1e-5))
        std = jnp.where(std <= (1e-5 ** 0.5), 0.0, std)  # PyG StdAggregation mask

        has = cnt > 0.0
        min_v = jnp.where(has, min_ref[...], 0.0)        # empty group -> 0
        max_v = jnp.where(has, max_ref[...], 0.0)

        agg = jnp.concatenate([mean, min_v, max_v, std], axis=-1)   # (TN, 4*Fp)
        agg16 = agg.astype(jnp.bfloat16)                 # cast once

        avg_log = scal_ref[0]
        inv_avg_log = scal_ref[1]                        # precomputed on host
        log_deg = jnp.log(cnt_c + 1.0)
        amp = log_deg * inv_avg_log                                   # (TN, 1)
        att = avg_log * pl.reciprocal(log_deg, approx=True)           # EUP slot

        # diag(amp) commutes with the matmul: scale the f32 OUTPUTS, not the bf16 LHS.
        out = jnp.dot(agg16, wid_ref[...], preferred_element_type=jnp.float32)
        out += amp * jnp.dot(agg16, wamp_ref[...], preferred_element_type=jnp.float32)
        out += att * jnp.dot(agg16, watt_ref[...], preferred_element_type=jnp.float32)
        o_ref[...] = out + b_ref[...]


def pna_agg_forward(x, index, weight_t, bias, num_nodes, avg_deg_log,
                    *, node_tile=None, edge_tile=None):
    """x: (E, F) f32, index: (E,) int, weight_t: (12F, H) f32 (pre-transposed), bias: (H,)."""
    E, F = x.shape
    K, H = weight_t.shape
    assert K == 12 * F

    # MXU-friendly default tiles (256x.. fills the v6e/v7x MXU; 128 suffices on v5e).
    # Pick node_tile so n_node_tiles is even/>=2 on v7x to use both TensorCores.
    TN = node_tile if node_tile is not None else 256
    TE = edge_tile if edge_tile is not None else 512
    TN = min(_round_up(TN, 8), _round_up(num_nodes, 8))
    TE = min(_round_up(TE, 8), _round_up(E, 8))

    Np = _round_up(num_nodes, TN)
    Ep = _round_up(E, TE)
    n_tiles = Np // TN
    n_chunks = Ep // TE
    Fp = _round_up(F, 128)        # lane-dense feature dim
    Hp = _round_up(H, 128)        # lane-dense output dim

    # ---- sort edges by destination; pad with "no node" edges to whole chunks ----
    x = x.astype(jnp.float32)
    idx = index.astype(jnp.int32)
    order = jnp.argsort(idx)
    xs = jnp.pad(x[order], ((0, Ep - E), (0, Fp - F)))              # zero pad rows/cols
    idxs = jnp.pad(idx[order], (0, Ep - E), constant_values=Np)     # pad edges match nothing

    # per-node-tile first chunk + number of chunks holding that tile's edges
    bounds = jnp.arange(n_tiles + 1, dtype=jnp.int32) * TN
    off = jnp.searchsorted(idxs, bounds).astype(jnp.int32)          # (n_tiles+1,)
    chunk_lo = jnp.minimum(off[:-1] // TE, n_chunks - 1).astype(jnp.int32)
    chunk_hi = (off[1:] + TE - 1) // TE
    chunk_n = jnp.where(off[1:] > off[:-1], chunk_hi - chunk_lo, 0).astype(jnp.int32)

    idx_lane = idxs.reshape(n_chunks, 1, TE)                        # lane layout per chunk
    idx_col = idxs.reshape(Ep, 1)                                   # sublane layout

    # ---- weights: split per scaler, zero-pad F->Fp rows and H->Hp cols ----------
    w = weight_t.astype(jnp.float32).reshape(3, 4, F, H)
    w = jnp.pad(w, ((0, 0), (0, 0), (0, Fp - F), (0, Hp - H)))
    w_id = w[0].reshape(4 * Fp, Hp).astype(jnp.bfloat16)
    w_amp = w[1].reshape(4 * Fp, Hp).astype(jnp.bfloat16)
    w_att = w[2].reshape(4 * Fp, Hp).astype(jnp.bfloat16)
    b2d = jnp.pad(bias.astype(jnp.float32), (0, Hp - H)).reshape(1, Hp)

    avg = jnp.asarray(avg_deg_log, jnp.float32)
    scal = jnp.stack([avg, 1.0 / avg]).astype(jnp.float32)          # [avg_log, 1/avg_log]

    grid_spec = pltpu.PrefetchScalarGridSpec(
        num_scalar_prefetch=2,                       # chunk_lo, chunk_n
        grid=(n_tiles, n_chunks),
        in_specs=[
            pl.BlockSpec(memory_space=pltpu.MemorySpace.SMEM),               # avg scalars
            pl.BlockSpec((1, 1, TE), lambda i, j, lo, nc: (_edge_chunk(i, j, lo, nc), 0, 0)),
            pl.BlockSpec((TE, 1),    lambda i, j, lo, nc: (_edge_chunk(i, j, lo, nc), 0)),
            pl.BlockSpec((TE, Fp),   lambda i, j, lo, nc: (_edge_chunk(i, j, lo, nc), 0)),
            pl.BlockSpec((4 * Fp, Hp), lambda i, j, lo, nc: (0, 0)),          # W_identity
            pl.BlockSpec((4 * Fp, Hp), lambda i, j, lo, nc: (0, 0)),          # W_amplification
            pl.BlockSpec((4 * Fp, Hp), lambda i, j, lo, nc: (0, 0)),          # W_attenuation
            pl.BlockSpec((1, Hp),      lambda i, j, lo, nc: (0, 0)),          # bias
        ],
        out_specs=pl.BlockSpec((TN, Hp), lambda i, j, lo, nc: (i, 0)),
        scratch_shapes=[
            pltpu.VMEM((TN, Fp), jnp.float32),     # running sum
            pltpu.VMEM((TN, Fp), jnp.float32),     # running sum of squares
            pltpu.VMEM((TN, 1), jnp.float32),      # running count
            pltpu.VMEM((TN, Fp), jnp.float32),     # running min
            pltpu.VMEM((TN, Fp), jnp.float32),     # running max
        ],
    )

    out = pl.pallas_call(
        _pna_kernel,
        out_shape=jax.ShapeDtypeStruct((Np, Hp), jnp.float32),
        grid_spec=grid_spec,
        compiler_params=pltpu.CompilerParams(
            dimension_semantics=("parallel", "arbitrary"),
            vmem_limit_bytes=64 * 1024 * 1024),
    )(chunk_lo, chunk_n, scal, idx_lane, idx_col, xs, w_id, w_amp, w_att, b2d)
    return out[:num_nodes, :H]


def pna_agg_reference(x, index, weight_t, bias, num_nodes, avg_deg_log):
    """Pure-JAX reference matching the PyTorch/PyG semantics."""
    cnt = jax.ops.segment_sum(jnp.ones((x.shape[0],), jnp.float32), index,
                              num_nodes)[:, None]
    cnt_c = jnp.maximum(cnt, 1.0)
    mean = jax.ops.segment_sum(x, index, num_nodes) / cnt_c
    mean2 = jax.ops.segment_sum(x * x, index, num_nodes) / cnt_c
    var = mean2 - mean * mean
    std = jnp.sqrt(jnp.maximum(var, 1e-5))
    std = jnp.where(std <= (1e-5 ** 0.5), 0.0, std)
    mn = jnp.where(cnt > 0, jax.ops.segment_min(x, index, num_nodes), 0.0)
    mx = jnp.where(cnt > 0, jax.ops.segment_max(x, index, num_nodes), 0.0)
    agg = jnp.concatenate([mean, mn, mx, std], axis=-1)
    log_deg = jnp.log(cnt_c + 1.0)
    out = jnp.concatenate(
        [agg, agg * (log_deg / avg_deg_log), agg * (avg_deg_log / log_deg)], -1)
    return out @ weight_t + bias[None, :]


if __name__ == "__main__":
    n_hidden = 32          # F == H == n_hidden
    E = 40                 # number of messages / edges
    N = 16                 # number of destination nodes (dim_size)

    key = jax.random.PRNGKey(0)
    kx, ki, kw = jax.random.split(key, 3)

    x = jax.random.normal(kx, (E, n_hidden), dtype=jnp.float32)
    index = jax.random.randint(ki, (E,), 0, N, dtype=jnp.int32)

    # Degree histogram `deg` from the module's __init__ -> avg_deg['log'] scalar.
    deg_hist = jnp.array([0.0, 2.0, 3.0, 2.0, 1.0, 1.0], dtype=jnp.float32)
    bins = jnp.arange(deg_hist.shape[0], dtype=jnp.float32)
    avg_deg_log = float(jnp.sum(jnp.log(bins + 1.0) * deg_hist) / jnp.sum(deg_hist))

    # Linear(12*F -> H): deterministic kaiming-normal-ish weight, zero bias.
    fan_in = 12 * n_hidden
    weight_t = (jax.random.normal(kw, (fan_in, n_hidden), dtype=jnp.float32)
                * (2.0 / fan_in) ** 0.5)            # stored transposed: (12F, H)
    bias = jnp.zeros((n_hidden,), dtype=jnp.float32)

    # grid = (2 node tiles, 5 edge chunks): exercises init/accumulate/skip/finalize.
    out = pna_agg_forward(x, index, weight_t, bias, N, avg_deg_log,
                          node_tile=8, edge_tile=8)
    out = jax.block_until_ready(out)

    ref = pna_agg_reference(x, index, weight_t, bias, N, avg_deg_log)
    assert out.shape == (N, n_hidden)
    assert jnp.allclose(out, ref, atol=5e-2, rtol=5e-2), (
        f"max abs err {float(jnp.max(jnp.abs(out - ref)))}")

    print("KERNEL_OK")
</pallas_src>

<mosaic_0001>
module attributes {stable_mosaic.version = 11 : i64} {
  func.func @_pna_kernel(%arg0: i32, %arg1: i32, %arg2: memref<2xi32, #tpu.memory_space<smem>>, %arg3: memref<2xi32, #tpu.memory_space<smem>>, %arg4: memref<2xf32, #tpu.memory_space<smem>>, %arg5: memref<1x1x8xi32, #tpu.memory_space<vmem>>, %arg6: memref<8x1xi32, #tpu.memory_space<vmem>>, %arg7: memref<8x128xf32, #tpu.memory_space<vmem>>, %arg8: memref<512x128xbf16, #tpu.memory_space<vmem>>, %arg9: memref<512x128xbf16, #tpu.memory_space<vmem>>, %arg10: memref<512x128xbf16, #tpu.memory_space<vmem>>, %arg11: memref<1x128xf32, #tpu.memory_space<vmem>>, %arg12: memref<8x128xf32, #tpu.memory_space<vmem>>, %arg13: memref<8x128xf32, #tpu.memory_space<vmem>>, %arg14: memref<8x128xf32, #tpu.memory_space<vmem>>, %arg15: memref<8x1xf32, #tpu.memory_space<vmem>>, %arg16: memref<8x128xf32, #tpu.memory_space<vmem>>, %arg17: memref<8x128xf32, #tpu.memory_space<vmem>>) attributes {dimension_semantics = [#tpu.dimension_semantics<parallel>, #tpu.dimension_semantics<arbitrary>], iteration_bounds = array<i64: 2, 5>, scalar_prefetch = 2 : i64, scratch_operands = 5 : i64, tpu.core_type = #tpu.core_type<tc>, window_params = [{transform_indices = @transform_0, window_bounds = array<i64: 2>}, {transform_indices = @transform_1, window_bounds = array<i64: 1, 1, 8>}, {transform_indices = @transform_2, window_bounds = array<i64: 8, 1>}, {transform_indices = @transform_3, window_bounds = array<i64: 8, 128>}, {pipeline_mode = #tpu.pipeline_mode<synchronous>, transform_indices = @transform_4, window_bounds = array<i64: 512, 128>}, {pipeline_mode = #tpu.pipeline_mode<synchronous>, transform_indices = @transform_5, window_bounds = array<i64: 512, 128>}, {pipeline_mode = #tpu.pipeline_mode<synchronous>, transform_indices = @transform_6, window_bounds = array<i64: 512, 128>}, {pipeline_mode = #tpu.pipeline_mode<synchronous>, transform_indices = @transform_7, window_bounds = array<i64: 1, 128>}, {transform_indices = @transform_8, window_bounds = array<i64: 8, 128>}]} {
    %c0_i32 = arith.constant 0 : i32
    %0 = arith.cmpi eq, %arg1, %c0_i32 : i32
    %1 = arith.extui %0 : i1 to i32
    %c0_i32_0 = arith.constant 0 : i32
    %2 = arith.cmpi ne, %1, %c0_i32_0 : i32
    scf.if %2 {
      %cst = arith.constant 0.000000e+00 : f32
      %11 = vector.broadcast %cst : f32 to vector<8x128xf32>
      %c0 = arith.constant 0 : index
      %c0_3 = arith.constant 0 : index
      %12 = vector.load %arg13[%c0, %c0_3] : memref<8x128xf32, #tpu.memory_space<vmem>>, vector<8x128xf32>
      tpu.vector_store %arg13[%c0, %c0_3], %11 {strides = array<i32>} : memref<8x128xf32, #tpu.memory_space<vmem>>, vector<8x128xf32>,
      %cst_4 = arith.constant 0.000000e+00 : f32
      %13 = vector.broadcast %cst_4 : f32 to vector<8x128xf32>
      %c0_5 = arith.constant 0 : index
      %c0_6 = arith.constant 0 : index
      %14 = vector.load %arg14[%c0_5, %c0_6] : memref<8x128xf32, #tpu.memory_space<vmem>>, vector<8x128xf32>
      tpu.vector_store %arg14[%c0_5, %c0_6], %13 {strides = array<i32>} : memref<8x128xf32, #tpu.memory_space<vmem>>, vector<8x128xf32>,
      %cst_7 = arith.constant 0.000000e+00 : f32
      %15 = vector.broadcast %cst_7 : f32 to vector<8x1xf32>
      %c0_8 = arith.constant 0 : index
      %c0_9 = arith.constant 0 : index
      %16 = vector.load %arg15[%c0_8, %c0_9] : memref<8x1xf32, #tpu.memory_space<vmem>>, vector<8x1xf32>
      tpu.vector_store %arg15[%c0_8, %c0_9], %15 {strides = array<i32>} : memref<8x1xf32, #tpu.memory_space<vmem>>, vector<8x1xf32>,
      %cst_10 = arith.constant 0x7F800000 : f32
      %17 = vector.broadcast %cst_10 : f32 to vector<8x128xf32>
      %c0_11 = arith.constant 0 : index
      %c0_12 = arith.constant 0 : index
      %18 = vector.load %arg16[%c0_11, %c0_12] : memref<8x128xf32, #tpu.memory_space<vmem>>, vector<8x128xf32>
      tpu.vector_store %arg16[%c0_11, %c0_12], %17 {strides = array<i32>} : memref<8x128xf32, #tpu.memory_space<vmem>>, vector<8x128xf32>,
      %cst_13 = arith.constant 0xFF800000 : f32
      %19 = vector.broadcast %cst_13 : f32 to vector<8x128xf32>
      %c0_14 = arith.constant 0 : index
      %c0_15 = arith.constant 0 : index
      %20 = vector.load %arg17[%c0_14, %c0_15] : memref<8x128xf32, #tpu.memory_space<vmem>>, vector<8x128xf32>
      tpu.vector_store %arg17[%c0_14, %c0_15], %19 {strides = array<i32>} : memref<8x128xf32, #tpu.memory_space<vmem>>, vector<8x128xf32>,
    } else {
    }
    %3 = arith.index_cast %arg0 : i32 to index
    %4 = memref.load %arg3[%3] : memref<2xi32, #tpu.memory_space<smem>>
    %5 = arith.cmpi slt, %arg1, %4 : i32
    %6 = arith.extui %5 : i1 to i32
    %c0_i32_1 = arith.constant 0 : i32
    %7 = arith.cmpi ne, %6, %c0_i32_1 : i32
    scf.if %7 {
      %c0 = arith.constant 0 : index
      %c0_3 = arith.constant 0 : index
      %11 = vector.load %arg7[%c0, %c0_3] : memref<8x128xf32, #tpu.memory_space<vmem>>, vector<8x128xf32>
      %c8_i32 = arith.constant 8 : i32
      %12 = arith.muli %arg0, %c8_i32 : i32
      %c0_4 = arith.constant 0 : index
      %c0_5 = arith.constant 0 : index
      %c0_6 = arith.constant 0 : index
      %13 = vector.load %arg5[%c0_4, %c0_5, %c0_6] : memref<1x1x8xi32, #tpu.memory_space<vmem>>, vector<1x1x8xi32>
      %14 = vector.shape_cast %13 : vector<1x1x8xi32> to vector<1x8xi32>
      %15 = vector.broadcast %12 : i32 to vector<1x8xi32>
      %16 = arith.subi %14, %15 : vector<1x8xi32>
      %c0_7 = arith.constant 0 : index
      %c0_8 = arith.constant 0 : index
      %17 = vector.load %arg6[%c0_7, %c0_8] : memref<8x1xi32, #tpu.memory_space<vmem>>, vector<8x1xi32>
      %18 = vector.broadcast %12 : i32 to vector<8x1xi32>
      %19 = arith.subi %17, %18 : vector<8x1xi32>
      %20 = tpu.iota {dimensions = array<i32: 0>} : vector<8x8xi32>
      %21 = vector.broadcast %16 : vector<1x8xi32> to vector<8x8xi32>
      %22 = arith.cmpi eq, %20, %21 : vector<8x8xi32>
      %23 = arith.extui %22 : vector<8x8xi1> to vector<8x8xi32>
      %24 = arith.sitofp %23 : vector<8x8xi32> to vector<8x8xf32>
      %c0_9 = arith.constant 0 : index
      %c0_10 = arith.constant 0 : index
      %25 = vector.load %arg13[%c0_9, %c0_10] : memref<8x128xf32, #tpu.memory_space<vmem>>, vector<8x128xf32>
      %cst = arith.constant dense<0.000000e+00> : vector<8x128xf32>
      %26 = tpu.matmul %24, %11, %cst {dimension_numbers = #tpu.dot_dimension_numbers<[1], [0], [0], [1], [0, 0, 1, 1], [], []>} : vector<8x8xf32>, vector<8x128xf32>, vector<8x128xf32> -> vector<8x128xf32>
      %27 = arith.addf %25, %26 : vector<8x128xf32>
      %c0_11 = arith.constant 0 : index
      %c0_12 = arith.constant 0 : index
      %28 = vector.load %arg13[%c0_11, %c0_12] : memref<8x128xf32, #tpu.memory_space<vmem>>, vector<8x128xf32>
      tpu.vector_store %arg13[%c0_11, %c0_12], %27 {strides = array<i32>} : memref<8x128xf32, #tpu.memory_space<vmem>>, vector<8x128xf32>,
      %c0_13 = arith.constant 0 : index
      %c0_14 = arith.constant 0 : index
      %29 = vector.load %arg14[%c0_13, %c0_14] : memref<8x128xf32, #tpu.memory_space<vmem>>, vector<8x128xf32>
      %30 = arith.mulf %11, %11 : vector<8x128xf32>
      %cst_15 = arith.constant dense<0.000000e+00> : vector<8x128xf32>
      %31 = tpu.matmul %24, %30, %cst_15 {dimension_numbers = #tpu.dot_dimension_numbers<[1], [0], [0], [1], [0, 0, 1, 1], [], []>} : vector<8x8xf32>, vector<8x128xf32>, vector<8x128xf32> -> vector<8x128xf32>
      %32 = arith.addf %29, %31 : vector<8x128xf32>
      %c0_16 = arith.constant 0 : index
      %c0_17 = arith.constant 0 : index
      %33 = vector.load %arg14[%c0_16, %c0_17] : memref<8x128xf32, #tpu.memory_space<vmem>>, vector<8x128xf32>
      tpu.vector_store %arg14[%c0_16, %c0_17], %32 {strides = array<i32>} : memref<8x128xf32, #tpu.memory_space<vmem>>, vector<8x128xf32>,
      %c0_18 = arith.constant 0 : index
      %c0_19 = arith.constant 0 : index
      %34 = vector.load %arg15[%c0_18, %c0_19] : memref<8x1xf32, #tpu.memory_space<vmem>>, vector<8x1xf32>
      %cst_20 = arith.constant dense<0.000000e+00> : vector<8xf32>
      %35 = vector.multi_reduction <add>, %24, %cst_20 [1] : vector<8x8xf32> to vector<8xf32>
      %36 = vector.shape_cast %35 : vector<8xf32> to vector<8x1xf32>
      %37 = arith.addf %34, %36 : vector<8x1xf32>
      %c0_21 = arith.constant 0 : index
      %c0_22 = arith.constant 0 : index
      %38 = vector.load %arg15[%c0_21, %c0_22] : memref<8x1xf32, #tpu.memory_space<vmem>>, vector<8x1xf32>
      tpu.vector_store %arg15[%c0_21, %c0_22], %37 {strides = array<i32>} : memref<8x1xf32, #tpu.memory_space<vmem>>, vector<8x1xf32>,
      %c0_i32_23 = arith.constant 0 : i32
      %c8_i32_24 = arith.constant 8 : i32
      %39 = arith.muli %c0_i32_23, %c8_i32_24 : i32
      %40 = tpu.assume_multiple %39, 8 : i32
      %c8_i32_25 = arith.constant 8 : i32
      %41 = arith.muli %c0_i32_23, %c8_i32_25 : i32
      %c0_i32_26 = arith.constant 0 : i32
      %42 = arith.addi %41, %c0_i32_26 : i32
      %43 = vector.broadcast %42 : i32 to vector<8x1xi32>
      %44 = arith.cmpi eq, %19, %43 : vector<8x1xi32>
      %cst_27 = arith.constant 0x7F800000 : f32
      %45 = vector.shape_cast %44 : vector<8x1xi1> to vector<8x1xi1>
      %46 = vector.broadcast %45 : vector<8x1xi1> to vector<8x128xi1>
      %47 = vector.broadcast %cst_27 : f32 to vector<8x128xf32>
      %48 = arith.select %46, %11, %47 : vector<8x128xi1>, vector<8x128xf32>
      %cst_28 = arith.constant dense<0x7F800000> : vector<128xf32>
      %49 = vector.multi_reduction <minimumf>, %48, %cst_28 [0] : vector<8x128xf32> to vector<128xf32>
      %50 = vector.shape_cast %49 : vector<128xf32> to vector<1x128xf32>
      %cst_29 = arith.constant 0xFF800000 : f32
      %51 = vector.shape_cast %44 : vector<8x1xi1> to vector<8x1xi1>
      %52 = vector.broadcast %51 : vector<8x1xi1> to vector<8x128xi1>
      %53 = vector.broadcast %cst_29 : f32 to vector<8x128xf32>
      %54 = arith.select %52, %11, %53 : vector<8x128xi1>, vector<8x128xf32>
      %cst_30 = arith.constant dense<0xFF800000> : vector<128xf32>
      %55 = vector.multi_reduction <maximumf>, %54, %cst_30 [0] : vector<8x128xf32> to vector<128xf32>
      %56 = vector.shape_cast %55 : vector<128xf32> to vector<1x128xf32>
      %c8_i32_31 = arith.constant 8 : i32
      %57 = arith.muli %c0_i32_23, %c8_i32_31 : i32
      %c1_i32 = arith.constant 1 : i32
      %58 = arith.addi %57, %c1_i32 : i32
      %59 = vector.broadcast %58 : i32 to vector<8x1xi32>
      %60 = arith.cmpi eq, %19, %59 : vector<8x1xi32>
      %cst_32 = arith.constant 0x7F800000 : f32
      %61 = vector.shape_cast %60 : vector<8x1xi1> to vector<8x1xi1>
      %62 = vector.broadcast %61 : vector<8x1xi1> to vector<8x128xi1>
      %63 = vector.broadcast %cst_32 : f32 to vector<8x128xf32>
      %64 = arith.select %62, %11, %63 : vector<8x128xi1>, vector<8x128xf32>
      %cst_33 = arith.constant dense<0x7F800000> : vector<128xf32>
      %65 = vector.multi_reduction <minimumf>, %64, %cst_33 [0] : vector<8x128xf32> to vector<128xf32>
      %66 = vector.shape_cast %65 : vector<128xf32> to vector<1x128xf32>
      %cst_34 = arith.constant 0xFF800000 : f32
      %67 = vector.shape_cast %60 : vector<8x1xi1> to vector<8x1xi1>
      %68 = vector.broadcast %67 : vector<8x1xi1> to vector<8x128xi1>
      %69 = vector.broadcast %cst_34 : f32 to vector<8x128xf32>
      %70 = arith.select %68, %11, %69 : vector<8x128xi1>, vector<8x128xf32>
      %cst_35 = arith.constant dense<0xFF800000> : vector<128xf32>
      %71 = vector.multi_reduction <maximumf>, %70, %cst_35 [0] : vector<8x128xf32> to vector<128xf32>
      %72 = vector.shape_cast %71 : vector<128xf32> to vector<1x128xf32>
      %c8_i32_36 = arith.constant 8 : i32
      %73 = arith.muli %c0_i32_23, %c8_i32_36 : i32
      %c2_i32 = arith.constant 2 : i32
      %74 = arith.addi %73, %c2_i32 : i32
      %75 = vector.broadcast %74 : i32 to vector<8x1xi32>
      %76 = arith.cmpi eq, %19, %75 : vector<8x1xi32>
      %cst_37 = arith.constant 0x7F800000 : f32
      %77 = vector.shape_cast %76 : vector<8x1xi1> to vector<8x1xi1>
      %78 = vector.broadcast %77 : vector<8x1xi1> to vector<8x128xi1>
      %79 = vector.broadcast %cst_37 : f32 to vector<8x128xf32>
      %80 = arith.select %78, %11, %79 : vector<8x128xi1>, vector<8x128xf32>
      %cst_38 = arith.constant dense<0x7F800000> : vector<128xf32>
      %81 = vector.multi_reduction <minimumf>, %80, %cst_38 [0] : vector<8x128xf32> to vector<128xf32>
      %82 = vector.shape_cast %81 : vector<128xf32> to vector<1x128xf32>
      %cst_39 = arith.constant 0xFF800000 : f32
      %83 = vector.shape_cast %76 : vector<8x1xi1> to vector<8x1xi1>
      %84 = vector.broadcast %83 : vector<8x1xi1> to vector<8x128xi1>
      %85 = vector.broadcast %cst_39 : f32 to vector<8x128xf32>
      %86 = arith.select %84, %11, %85 : vector<8x128xi1>, vector<8x128xf32>
      %cst_40 = arith.constant dense<0xFF800000> : vector<128xf32>
      %87 = vector.multi_reduction <maximumf>, %86, %cst_40 [0] : vector<8x128xf32> to vector<128xf32>
      %88 = vector.shape_cast %87 : vector<128xf32> to vector<1x128xf32>
      %c8_i32_41 = arith.constant 8 : i32
      %89 = arith.muli %c0_i32_23, %c8_i32_41 : i32
      %c3_i32 = arith.constant 3 : i32
      %90 = arith.addi %89, %c3_i32 : i32
      %91 = vector.broadcast %90 : i32 to vector<8x1xi32>
      %92 = arith.cmpi eq, %19, %91 : vector<8x1xi32>
      %cst_42 = arith.constant 0x7F800000 : f32
      %93 = vector.shape_cast %92 : vector<8x1xi1> to vector<8x1xi1>
      %94 = vector.broadcast %93 : vector<8x1xi1> to vector<8x128xi1>
      %95 = vector.broadcast %cst_42 : f32 to vector<8x128xf32>
      %96 = arith.select %94, %11, %95 : vector<8x128xi1>, vector<8x128xf32>
      %cst_43 = arith.constant dense<0x7F800000> : vector<128xf32>
      %97 = vector.multi_reduction <minimumf>, %96, %cst_43 [0] : vector<8x128xf32> to vector<128xf32>
      %98 = vector.shape_cast %97 : vector<128xf32> to vector<1x128xf32>
      %cst_44 = arith.constant 0xFF800000 : f32
      %99 = vector.shape_cast %92 : vector<8x1xi1> to vector<8x1xi1>
      %100 = vector.broadcast %99 : vector<8x1xi1> to vector<8x128xi1>
      %101 = vector.broadcast %cst_44 : f32 to vector<8x128xf32>
      %102 = arith.select %100, %11, %101 : vector<8x128xi1>, vector<8x128xf32>
      %cst_45 = arith.constant dense<0xFF800000> : vector<128xf32>
      %103 = vector.multi_reduction <maximumf>, %102, %cst_45 [0] : vector<8x128xf32> to vector<128xf32>
      %104 = vector.shape_cast %103 : vector<128xf32> to vector<1x128xf32>
      %c8_i32_46 = arith.constant 8 : i32
      %105 = arith.muli %c0_i32_23, %c8_i32_46 : i32
      %c4_i32_47 = arith.constant 4 : i32
      %106 = arith.addi %105, %c4_i32_47 : i32
      %107 = vector.broadcast %106 : i32 to vector<8x1xi32>
      %108 = arith.cmpi eq, %19, %107 : vector<8x1xi32>
      %cst_48 = arith.constant 0x7F800000 : f32
      %109 = vector.shape_cast %108 : vector<8x1xi1> to vector<8x1xi1>
      %110 = vector.broadcast %109 : vector<8x1xi1> to vector<8x128xi1>
      %111 = vector.broadcast %cst_48 : f32 to vector<8x128xf32>
      %112 = arith.select %110, %11, %111 : vector<8x128xi1>, vector<8x128xf32>
      %cst_49 = arith.constant dense<0x7F800000> : vector<128xf32>
      %113 = vector.multi_reduction <minimumf>, %112, %cst_49 [0] : vector<8x128xf32> to vector<128xf32>
      %114 = vector.shape_cast %113 : vector<128xf32> to vector<1x128xf32>
      %cst_50 = arith.constant 0xFF800000 : f32
      %115 = vector.shape_cast %108 : vector<8x1xi1> to vector<8x1xi1>
      %116 = vector.broadcast %115 : vector<8x1xi1> to vector<8x128xi1>
      %117 = vector.broadcast %cst_50 : f32 to vector<8x128xf32>
      %118 = arith.select %116, %11, %117 : vector<8x128xi1>, vector<8x128xf32>
      %cst_51 = arith.constant dense<0xFF800000> : vector<128xf32>
      %119 = vector.multi_reduction <maximumf>, %118, %cst_51 [0] : vector<8x128xf32> to vector<128xf32>
      %120 = vector.shape_cast %119 : vector<128xf32> to vector<1x128xf32>
      %c8_i32_52 = arith.constant 8 : i32
      %121 = arith.muli %c0_i32_23, %c8_i32_52 : i32
      %c5_i32 = arith.constant 5 : i32
      %122 = arith.addi %121, %c5_i32 : i32
      %123 = vector.broadcast %122 : i32 to vector<8x1xi32>
      %124 = arith.cmpi eq, %19, %123 : vector<8x1xi32>
      %cst_53 = arith.constant 0x7F800000 : f32
      %125 = vector.shape_cast %124 : vector<8x1xi1> to vector<8x1xi1>
      %126 = vector.broadcast %125 : vector<8x1xi1> to vector<8x128xi1>
      %127 = vector.broadcast %cst_53 : f32 to vector<8x128xf32>
      %128 = arith.select %126, %11, %127 : vector<8x128xi1>, vector<8x128xf32>
      %cst_54 = arith.constant dense<0x7F800000> : vector<128xf32>
      %129 = vector.multi_reduction <minimumf>, %128, %cst_54 [0] : vector<8x128xf32> to vector<128xf32>
      %130 = vector.shape_cast %129 : vector<128xf32> to vector<1x128xf32>
      %cst_55 = arith.constant 0xFF800000 : f32
      %131 = vector.shape_cast %124 : vector<8x1xi1> to vector<8x1xi1>
      %132 = vector.broadcast %131 : vector<8x1xi1> to vector<8x128xi1>
      %133 = vector.broadcast %cst_55 : f32 to vector<8x128xf32>
      %134 = arith.select %132, %11, %133 : vector<8x128xi1>, vector<8x128xf32>
      %cst_56 = arith.constant dense<0xFF800000> : vector<128xf32>
      %135 = vector.multi_reduction <maximumf>, %134, %cst_56 [0] : vector<8x128xf32> to vector<128xf32>
      %136 = vector.shape_cast %135 : vector<128xf32> to vector<1x128xf32>
      %c8_i32_57 = arith.constant 8 : i32
      %137 = arith.muli %c0_i32_23, %c8_i32_57 : i32
      %c6_i32 = arith.constant 6 : i32
      %138 = arith.addi %137, %c6_i32 : i32
      %139 = vector.broadcast %138 : i32 to vector<8x1xi32>
      %140 = arith.cmpi eq, %19, %139 : vector<8x1xi32>
      %cst_58 = arith.constant 0x7F800000 : f32
      %141 = vector.shape_cast %140 : vector<8x1xi1> to vector<8x1xi1>
      %142 = vector.broadcast %141 : vector<8x1xi1> to vector<8x128xi1>
      %143 = vector.broadcast %cst_58 : f32 to vector<8x128xf32>
      %144 = arith.select %142, %11, %143 : vector<8x128xi1>, vector<8x128xf32>
      %cst_59 = arith.constant dense<0x7F800000> : vector<128xf32>
      %145 = vector.multi_reduction <minimumf>, %144, %cst_59 [0] : vector<8x128xf32> to vector<128xf32>
      %146 = vector.shape_cast %145 : vector<128xf32> to vector<1x128xf32>
      %cst_60 = arith.constant 0xFF800000 : f32
      %147 = vector.shape_cast %140 : vector<8x1xi1> to vector<8x1xi1>
      %148 = vector.broadcast %147 : vector<8x1xi1> to vector<8x128xi1>
      %149 = vector.broadcast %cst_60 : f32 to vector<8x128xf32>
      %150 = arith.select %148, %11, %149 : vector<8x128xi1>, vector<8x128xf32>
      %cst_61 = arith.constant dense<0xFF800000> : vector<128xf32>
      %151 = vector.multi_reduction <maximumf>, %150, %cst_61 [0] : vector<8x128xf32> to vector<128xf32>
      %152 = vector.shape_cast %151 : vector<128xf32> to vector<1x128xf32>
      %c8_i32_62 = arith.constant 8 : i32
      %153 = arith.muli %c0_i32_23, %c8_i32_62 : i32
      %c7_i32 = arith.constant 7 : i32
      %154 = arith.addi %153, %c7_i32 : i32
      %155 = vector.broadcast %154 : i32 to vector<8x1xi32>
      %156 = arith.cmpi eq, %19, %155 : vector<8x1xi32>
      %cst_63 = arith.constant 0x7F800000 : f32
      %157 = vector.shape_cast %156 : vector<8x1xi1> to vector<8x1xi1>
      %158 = vector.broadcast %157 : vector<8x1xi1> to vector<8x128xi1>
      %159 = vector.broadcast %cst_63 : f32 to vector<8x128xf32>
      %160 = arith.select %158, %11, %159 : vector<8x128xi1>, vector<8x128xf32>
      %cst_64 = arith.constant dense<0x7F800000> : vector<128xf32>
      %161 = vector.multi_reduction <minimumf>, %160, %cst_64 [0] : vector<8x128xf32> to vector<128xf32>
      %162 = vector.shape_cast %161 : vector<128xf32> to vector<1x128xf32>
      %cst_65 = arith.constant 0xFF800000 : f32
      %163 = vector.shape_cast %156 : vector<8x1xi1> to vector<8x1xi1>
      %164 = vector.broadcast %163 : vector<8x1xi1> to vector<8x128xi1>
      %165 = vector.broadcast %cst_65 : f32 to vector<8x128xf32>
      %166 = arith.select %164, %11, %165 : vector<8x128xi1>, vector<8x128xf32>
      %cst_66 = arith.constant dense<0xFF800000> : vector<128xf32>
      %167 = vector.multi_reduction <maximumf>, %166, %cst_66 [0] : vector<8x128xf32> to vector<128xf32>
      %168 = vector.shape_cast %167 : vector<128xf32> to vector<1x128xf32>
      %169 = arith.index_cast %40 : i32 to index
      %c0_67 = arith.constant 0 : index
      %170 = vector.load %arg16[%169, %c0_67] : memref<8x128xf32, #tpu.memory_space<vmem>>, vector<8x128xf32>
      %171 = tpu.concatenate %50, %66, %82, %98, %114, %130, %146, %162 in 0 : vector<1x128xf32>, vector<1x128xf32>, vector<1x128xf32>, vector<1x128xf32>, vector<1x128xf32>, vector<1x128xf32>, vector<1x128xf32>, vector<1x128xf32> -> vector<8x128xf32>
      %172 = arith.minimumf %170, %171 : vector<8x128xf32>
      %173 = arith.index_cast %40 : i32 to index
      %c0_68 = arith.constant 0 : index
      %174 = vector.load %arg16[%173, %c0_68] : memref<8x128xf32, #tpu.memory_space<vmem>>, vector<8x128xf32>
      tpu.vector_store %arg16[%173, %c0_68], %172 {strides = array<i32>} : memref<8x128xf32, #tpu.memory_space<vmem>>, vector<8x128xf32>,
      %175 = arith.index_cast %40 : i32 to index
      %c0_69 = arith.constant 0 : index
      %176 = vector.load %arg17[%175, %c0_69] : memref<8x128xf32, #tpu.memory_space<vmem>>, vector<8x128xf32>
      %177 = tpu.concatenate %56, %72, %88, %104, %120, %136, %152, %168 in 0 : vector<1x128xf32>, vector<1x128xf32>, vector<1x128xf32>, vector<1x128xf32>, vector<1x128xf32>, vector<1x128xf32>, vector<1x128xf32>, vector<1x128xf32> -> vector<8x128xf32>
      %178 = arith.maximumf %176, %177 : vector<8x128xf32>
      %179 = arith.index_cast %40 : i32 to index
      %c0_70 = arith.constant 0 : index
      %180 = vector.load %arg17[%179, %c0_70] : memref<8x128xf32, #tpu.memory_space<vmem>>, vector<8x128xf32>
      tpu.vector_store %arg17[%179, %c0_70], %178 {strides = array<i32>} : memref<8x128xf32, #tpu.memory_space<vmem>>, vector<8x128xf32>,
      %c1_i32_71 = arith.constant 1 : i32
    } else {
    }
    %c4_i32 = arith.constant 4 : i32
    %8 = arith.cmpi eq, %arg1, %c4_i32 : i32
    %9 = arith.extui %8 : i1 to i32
    %c0_i32_2 = arith.constant 0 : i32
    %10 = arith.cmpi ne, %9, %c0_i32_2 : i32
    scf.if %10 {
      %c0 = arith.constant 0 : index
      %c0_3 = arith.constant 0 : index
      %11 = vector.load %arg15[%c0, %c0_3] : memref<8x1xf32, #tpu.memory_space<vmem>>, vector<8x1xf32>
      %cst = arith.constant 1.000000e+00 : f32
      %12 = vector.broadcast %cst : f32 to vector<8x1xf32>
      %13 = arith.maximumf %11, %12 : vector<8x1xf32>
      %cst_4 = arith.constant 1.000000e+00 : f32
      %14 = vector.broadcast %cst_4 : f32 to vector<8x1xf32>
      %15 = arith.divf %14, %13 : vector<8x1xf32>
      %c0_5 = arith.constant 0 : index
      %c0_6 = arith.constant 0 : index
      %16 = vector.load %arg13[%c0_5, %c0_6] : memref<8x128xf32, #tpu.memory_space<vmem>>, vector<8x128xf32>
      %17 = vector.broadcast %15 : vector<8x1xf32> to vector<8x128xf32>
      %18 = arith.mulf %16, %17 : vector<8x128xf32>
      %c0_7 = arith.constant 0 : index
      %c0_8 = arith.constant 0 : index
      %19 = vector.load %arg14[%c0_7, %c0_8] : memref<8x128xf32, #tpu.memory_space<vmem>>, vector<8x128xf32>
      %20 = vector.broadcast %15 : vector<8x1xf32> to vector<8x128xf32>
      %21 = arith.mulf %19, %20 : vector<8x128xf32>
      %22 = arith.mulf %18, %18 : vector<8x128xf32>
      %23 = arith.subf %21, %22 : vector<8x128xf32>
      %cst_9 = arith.constant 9.99999974E-6 : f32
      %24 = vector.broadcast %cst_9 : f32 to vector<8x128xf32>
      %25 = arith.maximumf %23, %24 : vector<8x128xf32>
      %26 = math.sqrt %25 : vector<8x128xf32>
      %cst_10 = arith.constant 0.00316227763 : f32
      %27 = vector.broadcast %cst_10 : f32 to vector<8x128xf32>
      %28 = arith.cmpf ole, %26, %27 : vector<8x128xf32>
      %cst_11 = arith.constant 0.000000e+00 : f32
      %29 = vector.broadcast %cst_11 : f32 to vector<8x128xf32>
      %30 = arith.select %28, %29, %26 : vector<8x128xi1>, vector<8x128xf32>
      %cst_12 = arith.constant 0.000000e+00 : f32
      %31 = vector.broadcast %cst_12 : f32 to vector<8x1xf32>
      %32 = arith.cmpf ogt, %11, %31 : vector<8x1xf32>
      %c0_13 = arith.constant 0 : index
      %c0_14 = arith.constant 0 : index
      %33 = vector.load %arg16[%c0_13, %c0_14] : memref<8x128xf32, #tpu.memory_space<vmem>>, vector<8x128xf32>
      %cst_15 = arith.constant 0.000000e+00 : f32
      %34 = vector.shape_cast %32 : vector<8x1xi1> to vector<8x1xi1>
      %35 = vector.broadcast %34 : vector<8x1xi1> to vector<8x128xi1>
      %36 = vector.broadcast %cst_15 : f32 to vector<8x128xf32>
      %37 = arith.select %35, %33, %36 : vector<8x128xi1>, vector<8x128xf32>
      %c0_16 = arith.constant 0 : index
      %c0_17 = arith.constant 0 : index
      %38 = vector.load %arg17[%c0_16, %c0_17] : memref<8x128xf32, #tpu.memory_space<vmem>>, vector<8x128xf32>
      %cst_18 = arith.constant 0.000000e+00 : f32
      %39 = vector.shape_cast %32 : vector<8x1xi1> to vector<8x1xi1>
      %40 = vector.broadcast %39 : vector<8x1xi1> to vector<8x128xi1>
      %41 = vector.broadcast %cst_18 : f32 to vector<8x128xf32>
      %42 = arith.select %40, %38, %41 : vector<8x128xi1>, vector<8x128xf32>
      %43 = tpu.concatenate %18, %37, %42, %30 in 1 : vector<8x128xf32>, vector<8x128xf32>, vector<8x128xf32>, vector<8x128xf32> -> vector<8x512xf32>
      %44 = arith.truncf %43 : vector<8x512xf32> to vector<8x512xbf16>
      %c0_19 = arith.constant 0 : index
      %45 = memref.load %arg4[%c0_19] : memref<2xf32, #tpu.memory_space<smem>>
      %c1 = arith.constant 1 : index
      %46 = memref.load %arg4[%c1] : memref<2xf32, #tpu.memory_space<smem>>
      %cst_20 = arith.constant 1.000000e+00 : f32
      %47 = vector.broadcast %cst_20 : f32 to vector<8x1xf32>
      %48 = arith.addf %13, %47 : vector<8x1xf32>
      %49 = math.log %48 : vector<8x1xf32>
      %50 = vector.broadcast %46 : f32 to vector<8x1xf32>
      %51 = arith.mulf %49, %50 : vector<8x1xf32>
      %52 = tpu.reciprocal %49 {approx = true} : vector<8x1xf32> -> vector<8x1xf32>
      %53 = vector.broadcast %45 : f32 to vector<8x1xf32>
      %54 = arith.mulf %53, %52 : vector<8x1xf32>
      %c0_21 = arith.constant 0 : index
      %c0_22 = arith.constant 0 : index
      %55 = vector.load %arg8[%c0_21, %c0_22] : memref<512x128xbf16, #tpu.memory_space<vmem>>, vector<512x128xbf16>
      %cst_23 = arith.constant dense<0.000000e+00> : vector<8x128xf32>
      %56 = tpu.matmul %44, %55, %cst_23 {dimension_numbers = #tpu.dot_dimension_numbers<[1], [0], [0], [1], [0, 0, 1, 1], [], []>} : vector<8x512xbf16>, vector<512x128xbf16>, vector<8x128xf32> -> vector<8x128xf32>
      %c0_24 = arith.constant 0 : index
      %c0_25 = arith.constant 0 : index
      %57 = vector.load %arg9[%c0_24, %c0_25] : memref<512x128xbf16, #tpu.memory_space<vmem>>, vector<512x128xbf16>
      %cst_26 = arith.constant dense<0.000000e+00> : vector<8x128xf32>
      %58 = tpu.matmul %44, %57, %cst_26 {dimension_numbers = #tpu.dot_dimension_numbers<[1], [0], [0], [1], [0, 0, 1, 1], [], []>} : vector<8x512xbf16>, vector<512x128xbf16>, vector<8x128xf32> -> vector<8x128xf32>
      %59 = vector.broadcast %51 : vector<8x1xf32> to vector<8x128xf32>
      %60 = arith.mulf %59, %58 : vector<8x128xf32>
      %61 = arith.addf %56, %60 : vector<8x128xf32>
      %c0_27 = arith.constant 0 : index
      %c0_28 = arith.constant 0 : index
      %62 = vector.load %arg10[%c0_27, %c0_28] : memref<512x128xbf16, #tpu.memory_space<vmem>>, vector<512x128xbf16>
      %cst_29 = arith.constant dense<0.000000e+00> : vector<8x128xf32>
      %63 = tpu.matmul %44, %62, %cst_29 {dimension_numbers = #tpu.dot_dimension_numbers<[1], [0], [0], [1], [0, 0, 1, 1], [], []>} : vector<8x512xbf16>, vector<512x128xbf16>, vector<8x128xf32> -> vector<8x128xf32>
      %64 = vector.broadcast %54 : vector<8x1xf32> to vector<8x128xf32>
      %65 = arith.mulf %64, %63 : vector<8x128xf32>
      %66 = arith.addf %61, %65 : vector<8x128xf32>
      %c0_30 = arith.constant 0 : index
      %c0_31 = arith.constant 0 : index
      %67 = vector.load %arg11[%c0_30, %c0_31] : memref<1x128xf32, #tpu.memory_space<vmem>>, vector<1x128xf32>
      %68 = vector.broadcast %67 : vector<1x128xf32> to vector<8x128xf32>
      %69 = arith.addf %66, %68 : vector<8x128xf32>
      %c0_32 = arith.constant 0 : index
      %c0_33 = arith.constant 0 : index
      %70 = vector.load %arg12[%c0_32, %c0_33] : memref<8x128xf32, #tpu.memory_space<vmem>>, vector<8x128xf32>
      tpu.vector_store %arg12[%c0_32, %c0_33], %69 {strides = array<i32>} : memref<8x128xf32, #tpu.memory_space<vmem>>, vector<8x128xf32>,
    } else {
    }
    return
  }
  func.func @transform_0(%arg0: i32, %arg1: i32, %arg2: memref<2xi32, #tpu.memory_space<smem>>, %arg3: memref<2xi32, #tpu.memory_space<smem>>) -> i32 {
    %c0_i32 = arith.constant 0 : i32
    %c0_i32_0 = arith.constant 0 : i32
    return %c0_i32 : i32
  }
  func.func @transform_1(%arg0: i32, %arg1: i32, %arg2: memref<2xi32, #tpu.memory_space<smem>>, %arg3: memref<2xi32, #tpu.memory_space<smem>>) -> (i32, i32, i32) {
    %0 = arith.index_cast %arg0 : i32 to index
    %1 = memref.load %arg3[%0] : memref<2xi32, #tpu.memory_space<smem>>
    %c1_i32 = arith.constant 1 : i32
    %2 = arith.subi %1, %c1_i32 : i32
    %c0_i32 = arith.constant 0 : i32
    %3 = arith.maxsi %2, %c0_i32 : i32
    %4 = arith.index_cast %arg0 : i32 to index
    %5 = memref.load %arg2[%4] : memref<2xi32, #tpu.memory_space<smem>>
    %6 = arith.minsi %arg1, %3 : i32
    %7 = arith.addi %5, %6 : i32
    %c0_i32_0 = arith.constant 0 : i32
    %c0_i32_1 = arith.constant 0 : i32
    %c0_i32_2 = arith.constant 0 : i32
    return %7, %c0_i32_0, %c0_i32_1 : i32, i32, i32
  }
  func.func @transform_2(%arg0: i32, %arg1: i32, %arg2: memref<2xi32, #tpu.memory_space<smem>>, %arg3: memref<2xi32, #tpu.memory_space<smem>>) -> (i32, i32) {
    %0 = arith.index_cast %arg0 : i32 to index
    %1 = memref.load %arg3[%0] : memref<2xi32, #tpu.memory_space<smem>>
    %c1_i32 = arith.constant 1 : i32
    %2 = arith.subi %1, %c1_i32 : i32
    %c0_i32 = arith.constant 0 : i32
    %3 = arith.maxsi %2, %c0_i32 : i32
    %4 = arith.index_cast %arg0 : i32 to index
    %5 = memref.load %arg2[%4] : memref<2xi32, #tpu.memory_space<smem>>
    %6 = arith.minsi %arg1, %3 : i32
    %7 = arith.addi %5, %6 : i32
    %c0_i32_0 = arith.constant 0 : i32
    %c0_i32_1 = arith.constant 0 : i32
    return %7, %c0_i32_0 : i32, i32
  }
  func.func @transform_3(%arg0: i32, %arg1: i32, %arg2: memref<2xi32, #tpu.memory_space<smem>>, %arg3: memref<2xi32, #tpu.memory_space<smem>>) -> (i32, i32) {
    %0 = arith.index_cast %arg0 : i32 to index
    %1 = memref.load %arg3[%0] : memref<2xi32, #tpu.memory_space<smem>>
    %c1_i32 = arith.constant 1 : i32
    %2 = arith.subi %1, %c1_i32 : i32
    %c0_i32 = arith.constant 0 : i32
    %3 = arith.maxsi %2, %c0_i32 : i32
    %4 = arith.index_cast %arg0 : i32 to index
    %5 = memref.load %arg2[%4] : memref<2xi32, #tpu.memory_space<smem>>
    %6 = arith.minsi %arg1, %3 : i32
    %7 = arith.addi %5, %6 : i32
    %c0_i32_0 = arith.constant 0 : i32
    %c0_i32_1 = arith.constant 0 : i32
    return %7, %c0_i32_0 : i32, i32
  }
  func.func @transform_4(%arg0: i32, %arg1: i32, %arg2: memref<2xi32, #tpu.memory_space<smem>>, %arg3: memref<2xi32, #tpu.memory_space<smem>>) -> (i32, i32) {
    %c0_i32 = arith.constant 0 : i32
    %c0_i32_0 = arith.constant 0 : i32
    %c0_i32_1 = arith.constant 0 : i32
    return %c0_i32, %c0_i32_0 : i32, i32
  }
  func.func @transform_5(%arg0: i32, %arg1: i32, %arg2: memref<2xi32, #tpu.memory_space<smem>>, %arg3: memref<2xi32, #tpu.memory_space<smem>>) -> (i32, i32) {
    %c0_i32 = arith.constant 0 : i32
    %c0_i32_0 = arith.constant 0 : i32
    %c0_i32_1 = arith.constant 0 : i32
    return %c0_i32, %c0_i32_0 : i32, i32
  }
  func.func @transform_6(%arg0: i32, %arg1: i32, %arg2: memref<2xi32, #tpu.memory_space<smem>>, %arg3: memref<2xi32, #tpu.memory_space<smem>>) -> (i32, i32) {
    %c0_i32 = arith.constant 0 : i32
    %c0_i32_0 = arith.constant 0 : i32
    %c0_i32_1 = arith.constant 0 : i32
    return %c0_i32, %c0_i32_0 : i32, i32
  }
  func.func @transform_7(%arg0: i32, %arg1: i32, %arg2: memref<2xi32, #tpu.memory_space<smem>>, %arg3: memref<2xi32, #tpu.memory_space<smem>>) -> (i32, i32) {
    %c0_i32 = arith.constant 0 : i32
    %c0_i32_0 = arith.constant 0 : i32
    %c0_i32_1 = arith.constant 0 : i32
    return %c0_i32, %c0_i32_0 : i32, i32
  }
  func.func @transform_8(%arg0: i32, %arg1: i32, %arg2: memref<2xi32, #tpu.memory_space<smem>>, %arg3: memref<2xi32, #tpu.memory_space<smem>>) -> (i32, i32) {
    %c0_i32 = arith.constant 0 : i32
    %c0_i32_0 = arith.constant 0 : i32
    return %arg0, %c0_i32 : i32, i32
  }
}

</mosaic_0001>

<bundles_post_ra>
// kernel: tpu_custom_call.1
= control target key start
LH: loop header
LB: loop body
LE: loop exit
PB: predicated region body
PF: predicated region fallthrough
CT: control target
= control target key end

     0   :  { %s3363_s0 = inlined_call_operand.vmem [shape: s32[2], index: 0, kind: input, shape index: {}]   ;;  %s3364_s2 = inlined_call_operand.vmem [shape: f32[2], index: 2, kind: input, shape index: {}]   ;;  %s3365_s3 = inlined_call_operand.vmem [shape: s32[5,1,8], index: 3, kind: input, shape index: {}]   ;;  %s3366_s4 = inlined_call_operand.vmem [shape: s32[40,1], index: 4, kind: input, shape index: {}]   ;;  %s3367_s5 = inlined_call_operand.vmem [shape: f32[40,128], index: 5, kind: input, shape index: {}]   ;;  %s3368_s6 = inlined_call_operand.hbm [shape: bf16[512,128], index: 6, kind: input, shape index: {}]   ;;  %s3369_s7 = inlined_call_operand.hbm [shape: bf16[512,128], index: 7, kind: input, shape index: {}]   ;;  %s3370_s8 = inlined_call_operand.hbm [shape: bf16[512,128], index: 8, kind: input, shape index: {}]   ;;  %s3371_s9 = inlined_call_operand.vmem [shape: f32[1,128], index: 9, kind: input, shape index: {}]   ;;  %s3372_s10 = inlined_call_operand.hbm [shape: f32[16,128], index: 10, kind: output, shape index: {}]   ;;  %s3373_s1 = inlined_call_operand.vmem [shape: s32[2], index: 1, kind: input, shape index: {}]  }
   0x1   :  { %3378 = sst [smem:[#allocation29_spill]] %s3364_s2  ;;  %s15_s15 = sshll.u32 %s3363_s0, 4  ;;  %s16_s15 = int_to_ptr.vmem [resolvable:$true] %s15_s15 }
   0x2   :  { %3379 = sst [smem:[#allocation30_spill]] %s3368_s6  ;;  %s19_s18 = sshll.u32 %s3373_s1, 4  ;;  %s20_s18 = int_to_ptr.vmem [resolvable:$true] %s19_s18 }
   0x3   :  { %3380 = sst [smem:[#allocation31_spill]] %s3369_s7  ;;  %s2734_s19 = scalar_lea.vmem %s16_s15, 16 }
   0x4   :  { %3381 = sst [smem:[#allocation32_spill]] %s3370_s8  ;;  %p2735_p0 = scmp.ne.s32.totalorder %s16_s15, %s2734_s19 }
   0x5   :  { %p2739_p1 = scmp.lt.s32.totalorder %s16_s15, %s16_s15  ;;  %p2740_p2 = scmp.lt.s32.totalorder %s2734_s19, %s2734_s19 }
   0x7   :  { %p2741_p3 = por %p2740_p2, %p2739_p1 }
   0x9   :  { %p2742_p4 = pnand %p2741_p3, %p2735_p0 }
   0xb   :  { %2745 = shalt.err (!%p2742_p4)  }
   0xc   :  { %s2959_s20 = smov [#allocation8]   ;;  %s2746_s21 = scalar_lea.vmem %s20_s18, 16 }
   0xd   :  { %18 = dma.vmem_to_smem %s16_s15, 16, %s2959_s20, [#allocation7] }
   0xe   :  { %p2747_p5 = scmp.ne.s32.totalorder %s20_s18, %s2746_s21  ;;  %p2751_p6 = scmp.lt.s32.totalorder %s20_s18, %s20_s18 }
   0xf   :  { %p2752_p7 = scmp.lt.s32.totalorder %s2746_s21, %s2746_s21 }
  0x11   :  { %p2753_p8 = por %p2752_p7, %p2751_p6 }
  0x13   :  { %p2754_p9 = pnand %p2753_p8, %p2747_p5 }
  0x15   :  { %2757 = shalt.err (!%p2754_p9)  }
  0x16   :  { %s2960_s0 = smov [#allocation9]  }
  0x17   :  { %22 = dma.vmem_to_smem %s20_s18, 16, %s2960_s0, [#allocation7] }
  0x18   :  { %2909 = dma.done.wait [#allocation7], 32 }
  0x19   :  { %2910 = vsyncadd [#allocation7], 4294967264 }
  0x1a   :  { %24 = sfence }
  0x1b   :  { %25 = vsyncpa [#allocation13], 0 }
  0x1c   :  { %26 = vsyncpa [#allocation11], 0 }
  0x1d   :  { %27 = vsyncpa [#allocation16], 0 }
  0x1e   :  { %28 = vsyncpa [#allocation12], 0 }
  0x1f   :  { %30 = vsyncpa [#allocation12 + $0x1], 0  ;;  %s3036_s1 = smov 0   ;;  %s3038_s22 = smov 0  }
  0x20   :  { %s3040_s23 = smov 0   ;;  %s3042_s24 = smov 0  }
  0x21   :  { %s3044_s25 = smov 0   ;;  %s3046_s26 = smov 0  }
  0x22   :  { %s3048_s27 = smov 0   ;;  %s3050_s28 = smov 0  }
  0x23 LB: > { %3382 = sst [smem:[#allocation24_spill]] %s2949_s26  ;;  %s2190_s29 = sadd.s32 4294967295, %s2957_s28   ;;  %s2957_s28 = sphi %s3050_s28, %s36_s28   ;;  %s2953_s27 = sphi %s3048_s27, %s3406_s27   ;;  %s2949_s26 = sphi %s3046_s26, %s3405_s26   ;;  %s2945_s25 = sphi %s3044_s25, %s3404_s25   ;;  %s2941_s24 = sphi %s3042_s24, %s3403_s24   ;;  %s2937_s23 = sphi %s3040_s23, %s3409_s23   ;;  %s2933_s22 = sphi %s3038_s22, %s3408_s22   ;;  %s2929_s1 = sphi %s3036_s1, %s3407_s1  }
  0x24   : > { %3383 = sst [smem:[#allocation25_spill]] %s2953_s27  ;;  %s2191_s30 = sadd.s32 4294967294, %s2957_s28  }
  0x25   : > { %s45_s11 = sadd.s32 1, %s2949_s26  ;;  %s48_s12 = sadd.s32 1, %s2953_s27 }
  0x26   : > { %p46_p10 = scmp.ge.s32.totalorder %s45_s11, 5  ;;  %s286_s13 = sadd.s32 1, %s2937_s23 }
  0x27   : > { %p296_p11 = scmp.ne.s32.totalorder %s2937_s23, %s2933_s22  ;;  %p297_p12 = scmp.eq.s32.totalorder %s2190_s29, 9 }
  0x28   : > { %s3411_s11 = smov (%p46_p10, %s45_s11), 0  ;;  %s3413_s12 = smov (!%p46_p10, %s48_s12), %s2953_s27 }
  0x29   : > { %3384 = sst [smem:[#allocation26_spill]] %s3411_s11  ;;  %p3086_p13 = por %p297_p12, %p296_p11 }
  0x2a   : > { %p302_p0 = scmp.ne.s32.totalorder %s2933_s22, %s2929_s1  ;;  %p50_p1 = scmp.ge.s32.totalorder %s3413_s12, 2 }
  0x2b   : > { %p303_p2 = scmp.eq.s32.totalorder %s2191_s30, 9  ;;  %p2198_p3 = scmp.ge.s32.totalorder %s2957_s28, 1 }
  0x2c   : > { %p310_p4 = scmp.lt.s32.totalorder %s2957_s28, 11  ;;  %s3415_s12 = smov (%p50_p1, %s3413_s12), 0 }
  0x2d   : > { %3386 = sst [smem:[#allocation27_spill]] %s3415_s12  ;;  %p3096_p5 = por %p303_p2, %p302_p0 }
  0x2e   : > { %p3100_p6 = pnand %p2198_p3, %p310_p4  ;;  %s283_s17 = ssub.s32 %s2953_s27, %s3415_s12 }
  0x2f   : > { %s3387_s15 = scalar_select %p3096_p5, 1, 0 }
  0x30   : > { %p284_p7 = scmp.eq.s32.totalorder %s283_s17, 0  ;;  %p2521_p8 = pneg %p3100_p6 }
  0x31   : > { %p3108_p9 = scmp.eq.s32.totalorder %s2190_s29, 0  ;;  %s2961_s21 = smov [#allocation15]  }
  0x32   : > { %s3113_s19 = scalar_select %p284_p7, %s2937_s23, %s286_s13  }
  0x33   : > { %p3117_p10 = pnand %p3108_p9, %p2521_p8  ;;  %s346_s0 = sshll.u32 %s2961_s21, 4  ;;  %s347_s0 = int_to_ptr.vmem [resolvable:$true] %s346_s0 }
  0x34   : > { %3390 = sst [smem:[#allocation28_spill]] %s3113_s19  ;;  %s2769_s30 = scalar_lea.vmem %s347_s0, 4096 }
  0x35   : > { %p2760_p11 = pneg %p3117_p10  ;;  %p2770_p12 = scmp.ne.s32.totalorder %s347_s0, %s2769_s30 }
  0x36   : > { %p2777_p2 = scmp.lt.s32.totalorder %s347_s0, %s347_s0  ;;  %p2778_p3 = scmp.lt.s32.totalorder %s2769_s30, %s2769_s30 }
  0x37   : > { %p2772_p0 = pnand %p2770_p12, %p2760_p11 }
  0x38   : > { %p2779_p4 = por %p2778_p3, %p2777_p2 }
  0x39   : > { %p2773_p1 = pneg %p2772_p0 }
  0x3b   : > { %p2780_p7 = pnand %p2779_p4, %p2773_p1 }
  0x3d   : > { %2783 = shalt.err (!%p2780_p7)
}
  0x3e   : > { %s2962_s29 = smov 64   ;;  %s2963_s13 = smov 4  }
  0x3f   : > { %s3392_s7 = sld [smem:[#allocation31_spill]] }
  0x40   : > { %s3393_s2 = sld [smem:[#allocation29_spill]] }
  0x45   : > { %2530 = dma.hbm_to_vmem [thread:$0]  (!%p3117_p10), %s3392_s7, 4096, %s347_s0, [#allocation16], %s2962_s29, %s2962_s29, %s2963_s13  }
  0x46   : > { %s323_s27 = sshll.u32 %s3393_s2, 4  ;;  %s324_s27 = int_to_ptr.vmem [resolvable:$true] %s323_s27 }
  0x47   : > { %s2784_s30 = scalar_lea.vmem %s324_s27, 16  ;;  %p2792_p1 = scmp.lt.s32.totalorder %s324_s27, %s324_s27 }
  0x48   : > { %p2785_p8 = scmp.ne.s32.totalorder %s324_s27, %s2784_s30  ;;  %p2793_p2 = scmp.lt.s32.totalorder %s2784_s30, %s2784_s30 }
  0x4a   : > { %p2787_p12 = pnand %p2785_p8, %p2760_p11  ;;  %p2794_p3 = por %p2793_p2, %p2792_p1 }
  0x4c   : > { %p2788_p0 = pneg %p2787_p12 }
  0x4e   : > { %p2795_p4 = pnand %p2794_p3, %p2788_p0 }
  0x50   : > { %2798 = shalt.err (!%p2795_p4)
}
  0x51   : > { %s2964_s26 = smov [#allocation10]   ;;  %s2965_s0 = smov [#allocation14]  }
  0x52   : > { %2524 = dma.vmem_to_smem (!%p3117_p10), %s324_s27, 16, %s2964_s26, [#allocation13]  }
  0x53   : > { %s333_s11 = sshll.u32 %s2965_s0, 4  ;;  %s2966_s12 = smov [#allocation17]   ;;  %s334_s11 = int_to_ptr.vmem [resolvable:$true] %s333_s11 }
  0x54   : > { %s359_s17 = sshll.u32 %s2966_s12, 4  ;;  %s2810_s21 = scalar_lea.vmem %s334_s11, 4096  ;;  %s360_s17 = int_to_ptr.vmem [resolvable:$true] %s359_s17 }
  0x55   : > { %p2811_p7 = scmp.ne.s32.totalorder %s334_s11, %s2810_s21  ;;  %p2818_p5 = scmp.lt.s32.totalorder %s334_s11, %s334_s11 }
  0x56   : > { %p2819_p1 = scmp.lt.s32.totalorder %s2810_s21, %s2810_s21 }
  0x57   : > { %p2813_p8 = pnand %p2811_p7, %p2760_p11 }
  0x58   : > { %p2820_p0 = por %p2819_p1, %p2818_p5 }
  0x59   : > { %p2814_p12 = pneg %p2813_p8 }
  0x5b   : > { %p2821_p2 = pnand %p2820_p0, %p2814_p12 }
  0x5d   : > { %2824 = shalt.err (!%p2821_p2)
}
  0x5e   : > { %s3394_s6 = sld [smem:[#allocation30_spill]]  ;;  %s2836_s30 = scalar_lea.vmem %s360_s17, 4096 }
  0x5f   : > { %p2837_p3 = scmp.ne.s32.totalorder %s360_s17, %s2836_s30  ;;  %p2844_p5 = scmp.lt.s32.totalorder %s360_s17, %s360_s17 }
  0x60   : > { %p2845_p8 = scmp.lt.s32.totalorder %s2836_s30, %s2836_s30 }
  0x61   : > { %p2839_p4 = pnand %p2837_p3, %p2760_p11 }
  0x62   : > { %p2846_p12 = por %p2845_p8, %p2844_p5 }
  0x63   : > { %p2840_p7 = pneg %p2839_p4 }
  0x64   : > { %2527 = dma.hbm_to_vmem [thread:$0]  (!%p3117_p10), %s3394_s6, 4096, %s334_s11, [#allocation11], %s2962_s29, %s2962_s29, %s2963_s13  }
  0x65   : > { %p2847_p1 = pnand %p2846_p12, %p2840_p7 }
  0x67   : > { %2850 = shalt.err (!%p2847_p1)
}
  0x68   : > { %s3395_s8 = sld [smem:[#allocation32_spill]] }
  0x6a   : > { %446 = sbr.rel (%p3100_p6) target bundleno = 842 (0x34a), region = 52 }
  0x6e   : > { %2533 = dma.hbm_to_vmem [thread:$0]  (!%p3117_p10), %s3395_s8, 4096, %s360_s17, [#allocation16], %s2962_s29, %s2962_s29, %s2963_s13  }
  0x6f   : > { %2912 = dma.done.wait (%p3108_p9), [#allocation13], 16  }
  0x70   : > { %2914 = vsyncadd (%p3108_p9), [#allocation13], 4294967280 }
  0x71   : > { %2916 = dma.done.wait (%p3108_p9), [#allocation11], 4096  }
  0x72   : > { %2918 = vsyncadd (%p3108_p9), [#allocation11], 4294963200 }
  0x73   : > { %2920 = dma.done.wait (%p3108_p9), [#allocation16], 8192  }
  0x74   : > { %2922 = vsyncadd (%p3108_p9), [#allocation16], 4294959104 }
  0x75   : > { %464 = sfence }
  0x76   : > { %s3377_s16 = sand.u32 1, %s2933_s22   ;;  %s523_s20 = sld [smem:[#allocation9 + %s2945_s25]] }
  0x77   : > { %s3182_s29 = sshll.u32 %s3377_s16, 3  ;;  %s542_s13 = sld [smem:[#allocation9 + %s2945_s25]] }
  0x78   : > { %s562_s11 = sld [smem:[#allocation9 + %s2945_s25]]  ;;  %s522_s2 = scalar_lea.vmem [#allocation18], %s3182_s29 }
  0x79   : > { %s527_s17 = sld [smem:[#allocation8 + %s2945_s25]]  ;;  %p2215_p5 = scmp.ne.s32.totalorder %s2941_s24, 0 }
  0x7a   : > { %s546_s26 = sld [smem:[#allocation8 + %s2945_s25]] }
  0x7c   : > { %s2210_s18 = sadd.s32 4294967295, %s523_s20 }
  0x7d   : > { %p525_p6 = scmp.gt.s32.totalorder %s2210_s18, 0  ;;  %s2211_s21 = sadd.s32 4294967295, %s542_s13 }
  0x7e   : > { %p544_p9 = scmp.gt.s32.totalorder %s2211_s21, 0  ;;  %s2213_s27 = sadd.s32 4294967295, %s562_s11 }
  0x7f   : > { %s3417_s18 = smov (!%p525_p6, %s2210_s18), 0  ;;  %p564_p2 = scmp.gt.s32.totalorder %s2213_s27, 0 }
  0x80   : > { %p528_p10 = scmp.lt.s32.totalorder %s2941_s24, %s3417_s18  ;;  %s3419_s21 = smov (!%p544_p9, %s2211_s21), 0 }
  0x81   : > { %p547_p11 = scmp.lt.s32.totalorder %s2941_s24, %s3419_s21  ;;  %s566_s13 = sld [smem:[#allocation8 + %s2945_s25]] }
  0x82   : > { %s529_s30 = scalar_select %p528_p10, %s2941_s24, %s3417_s18 }
  0x83   : > { %s548_s12 = scalar_select %p547_p11, %s2941_s24, %s3419_s21 }
  0x84   : > { %s530_s0 = sadd.s32 %s529_s30, %s527_s17  ;;  %s3423_s27 = smov (!%p564_p2, %s2213_s27), 0 }
  0x85   : > { %p531_p0 = scmp.lt.s32.totalorder %s530_s0, 4  ;;  %s549_s20 = sadd.s32 %s548_s12, %s546_s26 }
  0x86   : > { %p550_p3 = scmp.lt.s32.totalorder %s549_s20, 4  ;;  %p567_p4 = scmp.lt.s32.totalorder %s2941_s24, %s3423_s27 }
  0x87   : > { %s3421_s0 = smov (!%p531_p0, %s530_s0), 4 }
  0x88   : > { %s533_s6 = scalar_lea.vmem %s3365_s3, %s3421_s0  ;;  %s3425_s20 = smov (!%p550_p3, %s549_s20), 4 }
  0x89   : > { %s2212_s11 = sshll.u32 %s3425_s20, 3 }
  0x8a   : > { %s553_s30 = scalar_lea.vmem %s3366_s4, %s2212_s11 }
  0x8b   : > { %s568_s21 = scalar_select %p567_p4, %s2941_s24, %s3423_s27 }
  0x8d   : > { %s569_s7 = sadd.s32 %s568_s21, %s566_s13 }
  0x8e   : > { %p570_p7 = scmp.lt.s32.totalorder %s569_s7, 4  ;;  %586 = sbr.rel (%p2215_p5) target bundleno = 151 (0x97), region = 72 }
  0x90   : > { %s3427_s7 = smov (!%p570_p7, %s569_s7), 4 }
  0x91   : > { %s2214_s8 = sshll.u32 %s3427_s7, 3 }
  0x92   : > { %s573_s19 = scalar_lea.vmem %s3367_s5, %s2214_s8 }
  0x93   : > { %vm589_vm0 = vcmask 7168   ;;  %v2967_v0 = vmov 0.0   ;;  %v2968_v1 = vmov inf   ;;  %v2969_v2 = vmov -inf  }
  0x94   : > { %587 = vst [vmem:[#allocation2] sm:$0xff] %v2967_v0  ;;  %588 = vst [vmem:[#allocation3] sm:$0xff] %v2967_v0 }
  0x95   : > { %590 = vst.msk [vmem:[#allocation4] sm:$0xff] %vm589_vm0, %v2967_v0  ;;  %591 = vst [vmem:[#allocation5] sm:$0xff] %v2968_v1 }
  0x96   : > { %592 = vst [vmem:[#allocation6] sm:$0xff] %v2969_v2 }
  0x97 PF: > { %s593_s7 = sld [smem:[#allocation9 + %s2945_s25]] }
  0x9d   : > { %p2216_p8 = scmp.ge.s32.totalorder %s2941_s24, %s593_s7 }
  0x9e   : > { %s2217_s8 = sshll.u32 (!%p2216_p8), %s2945_s25, 3 }
  0x9f   : > { %597 = sbr.rel (%p2216_p8) target bundleno = 370 (0x172), region = 76 }
  0xa4   : > { %v603_v3 = vld [vmem:[%s553_s30] sm:$0xff]  ;;  %v605_v5 = vlaneseq  ;;  %v2970_v6 = vmov 0   ;;  %v601_v7 = vstv %s2217_s8  ;;  %v2971_v11 = vmov 0.0  }
  0xa5   : > { %v3212_v4 = vld [vmem:[%s573_s19] sm:$0xff]  ;;  %2626 = vset.pattern.permute.xlu0 %v2970_v6  ;;  %2627 = vset.pattern.permute.xlu1 %v2970_v6  ;;  %v604_v10 = vsub.s32 %v603_v3, %v601_v7  ;;  %vm2972_vm1 = vmmov 0   ;;  %vm615_vm6 = vcmask 64512   ;;  %vm933_vm0 = vcmask 1040384  }
  0xa6   : > { %v692_v8 = vmul.f32 %v3212_v4, %v3212_v4  ;;  %v600_v9 = vld [vmem:[%s533_s6] sm:$0x1]  ;;  %2493 = vmatprep.subr.mxu0 %v2971_v11  ;;  %2498 = vmatprep.subr.mxu1 %v2971_v11  ;;  %v606_v13 = vshrl.u32 %v605_v5, 7 }
  0xa7   : > { %v602_v12 = vsub.s32 %v600_v9, %v601_v7  ;;  %2494 = vmatpush3.msra.mxu0 %v3212_v4  ;;  %2495 = vmatprep.mubr.msk.f32.mxu0 %vm2972_vm1, %v2971_v11  ;;  %vm772_vm2 = vcmp.eq.s32.totalorder %v604_v10, 0  ;;  %vm812_vm3 = vcmp.eq.s32.totalorder %v604_v10, 2  ;;  %vm792_vm4 = vcmp.eq.s32.totalorder %v604_v10, 1 }
  0xa8   : > { %2499 = vmatpush3.msra.mxu1 %v692_v8  ;;  %2500 = vmatprep.mubr.msk.f32.mxu1 %vm2972_vm1, %v2971_v11  ;;  %v609_v14 = vsub.s32 0, %v606_v13  ;;  %v773_v15 = vsel %vm772_vm2, 1, %v2970_v6  ;;  %v813_v16 = vsel %vm812_vm3, 1, %v2970_v6  ;;  %vm832_vm5 = vcmp.eq.s32.totalorder %v604_v10, 3 }
  0xa9   : > { %775 = vperm.xlu0 %2626, %v773_v15   ;;  %815 = vperm.xlu1 %2627, %v813_v16   ;;  %v793_v18 = vsel %vm792_vm4, 1, %v2970_v6  ;;  %v833_v19 = vsel %vm832_vm5, 1, %v2970_v6  ;;  %vm852_vm8 = vcmp.eq.s32.totalorder %v604_v10, 4  ;;  %vm872_vm9 = vcmp.eq.s32.totalorder %v604_v10, 5 }
  0xaa   : > { %v610_v17 = vrot.slane %v602_v12, %v609_v14  ;;  %v853_v21 = vsel %vm852_vm8, 1, %v2970_v6  ;;  %v873_v22 = vsel %vm872_vm9, 1, %v2970_v6  ;;  %vm892_vm10 = vcmp.eq.s32.totalorder %v604_v10, 6 }
  0xab   : > { %vm912_vm11 = vcmp.eq.s32.totalorder %v604_v10, 7  ;;  %v893_v23 = vsel %vm892_vm10, 1, %v2970_v6  ;;  %vm935_vm1 = vcmask 1041408   ;;  %vm937_vm2 = vcmask 1042432  }
  0xac   : > { %vm611_vm7 = vcmp.eq.s32.totalorder %v606_v13, %v610_v17  ;;  %v913_v24 = vsel %vm912_vm11, 1, %v2970_v6  ;;  %vm941_vm8 = vcmask 1044480   ;;  %vm943_vm9 = vcmask 1045504  }
  0xad   : > { %v2218_v20 = vsel %vm611_vm7, 1.0, %v2971_v11  ;;  %795 = vperm.xlu0 %2626, %v793_v18   ;;  %835 = vperm.xlu1 %2627, %v833_v19   ;;  %vm939_vm7 = vcmask 1043456   ;;  %vm945_vm10 = vcmask 1046528   ;;  %vm770_vm11 = vcmask 7168  }
  0xae   : > { %2496 = vmatmul.mubr.msk.f32.vlgmr.msra.gmra.mxu0 %vm615_vm6, %v2218_v20  ;;  %2501 = vmatmul.mubr.msk.f32.vlgmr.msra.gmra.mxu1 %vm615_vm6, %v2218_v20  ;;  %v766_v25 = vsel %vm615_vm6, %v2218_v20, 0.0 }
  0xb1   : > { %855 = vperm.xlu0 %2626, %v853_v21   ;;  %875 = vperm.xlu1 %2627, %v873_v22  }
  0xb5   : > { %895 = vperm.xlu0 %2626, %v893_v23   ;;  %915 = vperm.xlu1 %2627, %v913_v24  }
  0xd4   : > { %767 = vadd.xlane.f32.xlu0 %v766_v25 }
 0x124   : > { %v776_v26 = vpop.permute.xlu0 %775  ;;  %v816_v27 = vpop.permute.xlu1 %815 }
 0x125   : > { %vm777_vm12 = vcmp.eq.s32.totalorder %v776_v26, 1  ;;  %vm817_vm13 = vcmp.eq.s32.totalorder %v816_v27, 1 }
 0x126   : > { %v778_v28 = vsel %vm777_vm12, %v3212_v4, inf  ;;  %v785_v29 = vsel %vm777_vm12, %v3212_v4, -inf  ;;  %v818_v30 = vsel %vm817_vm13, %v3212_v4, inf  ;;  %v825_v31 = vsel %vm817_vm13, %v3212_v4, -inf }
 0x127   : > { %v779_v32 = vrot.slane %v778_v28, 4  ;;  %v786_v33 = vrot.slane %v785_v29, 4  ;;  %v819_v34 = vrot.slane %v818_v30, 4  ;;  %v826_v35 = vrot.slane %v825_v31, 4 }
 0x128   : > { %v796_v36 = vpop.permute.xlu0 %795  ;;  %v836_v41 = vpop.permute.xlu1 %835 }
 0x129   : > { %v780_v37 = vmin.f32 %v778_v28, %v779_v32  ;;  %v787_v38 = vmax.f32 %v785_v29, %v786_v33  ;;  %v820_v39 = vmin.f32 %v818_v30, %v819_v34  ;;  %v827_v40 = vmax.f32 %v825_v31, %v826_v35 }
 0x12a   : > { %vm797_vm14 = vcmp.eq.s32.totalorder %v796_v36, 1  ;;  %vm837_vm15 = vcmp.eq.s32.totalorder %v836_v41, 1 }
 0x12b   : > { %v781_v42 = vrot.slane %v780_v37, 2  ;;  %v788_v43 = vrot.slane %v787_v38, 2  ;;  %v821_v44 = vrot.slane %v820_v39, 2  ;;  %v828_v45 = vrot.slane %v827_v40, 2 }
 0x12c   : > { %v798_v46 = vsel %vm797_vm14, %v3212_v4, inf  ;;  %v805_v47 = vsel %vm797_vm14, %v3212_v4, -inf  ;;  %v838_v48 = vsel %vm837_vm15, %v3212_v4, inf  ;;  %v845_v49 = vsel %vm837_vm15, %v3212_v4, -inf  ;;  %v856_v50 = vpop.permute.xlu0 %855  ;;  %v876_v55 = vpop.permute.xlu1 %875 }
 0x12d   : > { %v782_v51 = vmin.f32 %v780_v37, %v781_v42  ;;  %v789_v52 = vmax.f32 %v787_v38, %v788_v43  ;;  %v822_v53 = vmin.f32 %v820_v39, %v821_v44  ;;  %v829_v54 = vmax.f32 %v827_v40, %v828_v45 }
 0x12e   : > { %v799_v56 = vrot.slane %v798_v46, 4  ;;  %v806_v57 = vrot.slane %v805_v47, 4  ;;  %v839_v58 = vrot.slane %v838_v48, 4  ;;  %v846_v59 = vrot.slane %v845_v49, 4 }
 0x12f   : > { %v783_v60 = vrot.slane %v782_v51, 1  ;;  %v790_v61 = vrot.slane %v789_v52, 1  ;;  %v823_v62 = vrot.slane %v822_v53, 1  ;;  %v830_v63 = vrot.slane %v829_v54, 1 }
 0x130   : > { %v800_v0 = vmin.f32 %v798_v46, %v799_v56  ;;  %v807_v1 = vmax.f32 %v805_v47, %v806_v57  ;;  %v840_v2 = vmin.f32 %v838_v48, %v839_v58  ;;  %v847_v3 = vmax.f32 %v845_v49, %v846_v59  ;;  %v896_v5 = vpop.permute.xlu0 %895  ;;  %v916_v10 = vpop.permute.xlu1 %915 }
 0x131   : > { %v784_v6 = vmin.f32 %v782_v51, %v783_v60  ;;  %v791_v7 = vmax.f32 %v789_v52, %v790_v61  ;;  %v824_v8 = vmin.f32 %v822_v53, %v823_v62  ;;  %v831_v9 = vmax.f32 %v829_v54, %v830_v63 }
 0x132   : > { %v801_v11 = vrot.slane %v800_v0, 2  ;;  %v808_v12 = vrot.slane %v807_v1, 2  ;;  %v841_v13 = vrot.slane %v840_v2, 2  ;;  %v848_v14 = vrot.slane %v847_v3, 2 }
 0x133   : > { %vm857_vm3 = vcmp.eq.s32.totalorder %v856_v50, 1  ;;  %vm877_vm4 = vcmp.eq.s32.totalorder %v876_v55, 1  ;;  %vm897_vm5 = vcmp.eq.s32.totalorder %v896_v5, 1  ;;  %vm917_vm6 = vcmp.eq.s32.totalorder %v916_v10, 1 }
 0x134   : > { %v802_v15 = vmin.f32 %v800_v0, %v801_v11  ;;  %v809_v16 = vmax.f32 %v807_v1, %v808_v12  ;;  %v842_v17 = vmin.f32 %v840_v2, %v841_v13  ;;  %v849_v18 = vmax.f32 %v847_v3, %v848_v14 }
 0x135   : > { %v858_v19 = vsel %vm857_vm3, %v3212_v4, inf  ;;  %v865_v20 = vsel %vm857_vm3, %v3212_v4, -inf  ;;  %v878_v21 = vsel %vm877_vm4, %v3212_v4, inf  ;;  %v885_v22 = vsel %vm877_vm4, %v3212_v4, -inf }
 0x136   : > { %v803_v23 = vrot.slane %v802_v15, 1  ;;  %v810_v24 = vrot.slane %v809_v16, 1  ;;  %v843_v25 = vrot.slane %v842_v17, 1  ;;  %v850_v26 = vrot.slane %v849_v18, 1 }
 0x137   : > { %v859_v27 = vrot.slane %v858_v19, 4  ;;  %v866_v28 = vrot.slane %v865_v20, 4  ;;  %v879_v29 = vrot.slane %v878_v21, 4  ;;  %v886_v30 = vrot.slane %v885_v22, 4 }
 0x138   : > { %v804_v31 = vmin.f32 %v802_v15, %v803_v23  ;;  %v811_v32 = vmax.f32 %v809_v16, %v810_v24  ;;  %v844_v33 = vmin.f32 %v842_v17, %v843_v25  ;;  %v851_v34 = vmax.f32 %v849_v18, %v850_v26 }
 0x139   : > { %v860_v35 = vmin.f32 %v858_v19, %v859_v27  ;;  %v867_v36 = vmax.f32 %v865_v20, %v866_v28  ;;  %v880_v37 = vmin.f32 %v878_v21, %v879_v29  ;;  %v887_v38 = vmax.f32 %v885_v22, %v886_v30  ;;  %v932_v29 = vld [vmem:[#allocation5] sm:$0xff]  ;;  %v949_v30 = vld [vmem:[#allocation6] sm:$0xff] }
 0x13a   : > { %v934_v39 = vsel %vm933_vm0, %v784_v6, %v804_v31  ;;  %v950_v40 = vsel %vm933_vm0, %v791_v7, %v811_v32  ;;  %v898_v41 = vsel %vm897_vm5, %v3212_v4, inf  ;;  %v905_v42 = vsel %vm897_vm5, %v3212_v4, -inf }
 0x13b   : > { %v936_v43 = vsel %vm935_vm1, %v934_v39, %v824_v8  ;;  %v951_v44 = vsel %vm935_vm1, %v950_v40, %v831_v9  ;;  %v861_v45 = vrot.slane %v860_v35, 2  ;;  %v868_v46 = vrot.slane %v867_v36, 2  ;;  %v614_v40 = vld [vmem:[#allocation2] sm:$0xff] }
 0x13c   : > { %v938_v47 = vsel %vm937_vm2, %v936_v43, %v844_v33  ;;  %v952_v48 = vsel %vm937_vm2, %v951_v44, %v851_v34  ;;  %v881_v49 = vrot.slane %v880_v37, 2  ;;  %v888_v50 = vrot.slane %v887_v38, 2 }
 0x13d   : > { %v862_v51 = vmin.f32 %v860_v35, %v861_v45  ;;  %v869_v52 = vmax.f32 %v867_v36, %v868_v46  ;;  %v899_v53 = vrot.slane %v898_v41, 4  ;;  %v906_v54 = vrot.slane %v905_v42, 4 }
 0x13e   : > { %v882_v55 = vmin.f32 %v880_v37, %v881_v49  ;;  %v889_v56 = vmax.f32 %v887_v38, %v888_v50  ;;  %v918_v57 = vsel %vm917_vm6, %v3212_v4, inf  ;;  %v925_v58 = vsel %vm917_vm6, %v3212_v4, -inf  ;;  %v765_v37 = vld [vmem:[#allocation4] sm:$0xff] }
 0x13f   : > { %v863_v59 = vrot.slane %v862_v51, 1  ;;  %v870_v60 = vrot.slane %v869_v52, 1  ;;  %v900_v61 = vmin.f32 %v898_v41, %v899_v53  ;;  %v907_v62 = vmax.f32 %v905_v42, %v906_v54  ;;  %v691_v41 = vld [vmem:[#allocation3] sm:$0xff] }
 0x140   : > { %v883_v63 = vrot.slane %v882_v55, 1  ;;  %v890_v0 = vrot.slane %v889_v56, 1  ;;  %v919_v1 = vrot.slane %v918_v57, 4  ;;  %v926_v2 = vrot.slane %v925_v58, 4 }
 0x141   : > { %v864_v3 = vmin.f32 %v862_v51, %v863_v59  ;;  %v871_v5 = vmax.f32 %v869_v52, %v870_v60  ;;  %v901_v6 = vrot.slane %v900_v61, 2  ;;  %v908_v7 = vrot.slane %v907_v62, 2 }
 0x142   : > { %v884_v8 = vmin.f32 %v882_v55, %v883_v63  ;;  %v891_v9 = vmax.f32 %v889_v56, %v890_v0  ;;  %v920_v11 = vmin.f32 %v918_v57, %v919_v1  ;;  %v927_v12 = vmax.f32 %v925_v58, %v926_v2 }
 0x143   : > { %v940_v13 = vsel %vm939_vm7, %v938_v47, %v864_v3  ;;  %v953_v4 = vsel %vm939_vm7, %v952_v48, %v871_v5  ;;  %v902_v10 = vmin.f32 %v900_v61, %v901_v6  ;;  %v909_v14 = vmax.f32 %v907_v62, %v908_v7 }
 0x144   : > { %v921_v15 = vrot.slane %v920_v11, 2  ;;  %v928_v16 = vrot.slane %v927_v12, 2  ;;  %v942_v19 = vsel %vm941_vm8, %v940_v13, %v884_v8  ;;  %v954_v20 = vsel %vm941_vm8, %v953_v4, %v891_v9 }
 0x145   : > { %v903_v17 = vrot.slane %v902_v10, 1  ;;  %v910_v18 = vrot.slane %v909_v14, 1 }
 0x146   : > { %v922_v21 = vmin.f32 %v920_v11, %v921_v15  ;;  %v929_v22 = vmax.f32 %v927_v12, %v928_v16 }
 0x147   : > { %v904_v23 = vmin.f32 %v902_v10, %v903_v17  ;;  %v911_v24 = vmax.f32 %v909_v14, %v910_v18 }
 0x148   : > { %v923_v25 = vrot.slane %v922_v21, 1  ;;  %v930_v26 = vrot.slane %v929_v22, 1 }
 0x149   : > { %v944_v27 = vsel %vm943_vm9, %v942_v19, %v904_v23  ;;  %v955_v28 = vsel %vm943_vm9, %v954_v20, %v911_v24 }
 0x14a   : > { %v924_v31 = vmin.f32 %v922_v21, %v923_v25  ;;  %v931_v32 = vmax.f32 %v929_v22, %v930_v26 }
 0x14c   : > { %v946_v33 = vsel %vm945_vm10, %v944_v27, %v924_v31  ;;  %v956_v34 = vsel %vm945_vm10, %v955_v28, %v931_v32 }
 0x14d   : > { %v947_v35 = vmin.f32 %v932_v29, %v946_v33  ;;  %v957_v36 = vmax.f32 %v949_v30, %v956_v34 }
 0x14f   : > { %948 = vst [vmem:[#allocation5] sm:$0xff] %v947_v35  ;;  %958 = vst [vmem:[#allocation6] sm:$0xff] %v957_v36 }
 0x15d   : > { %v768_v38 = vpop.xlane.xlu0 %767 }
 0x15e   : > { %v769_v39 = vadd.f32 %v768_v38, %v765_v37 }
 0x160   : > { %771 = vst.msk [vmem:[#allocation4] sm:$0xff] %vm770_vm11, %v769_v39 }
 0x16e   : > { %v685_v42 = vpop.f32.mrf.mxu0  ;;  %v759_v44 = vpop.f32.mrf.mxu1 }
 0x16f   : > { %v689_v43 = vadd.f32 %v685_v42, %v614_v40  ;;  %v763_v45 = vadd.f32 %v759_v44, %v691_v41 }
 0x170   : > { %v2497_v46 = vpop.f32.mrf.mxu0  ;;  %v2502_v47 = vpop.f32.mrf.mxu1 }
 0x171   : > { %690 = vst [vmem:[#allocation2] sm:$0xff] %v689_v43  ;;  %764 = vst [vmem:[#allocation3] sm:$0xff] %v763_v45 }
 0x172 PF: > { %p2221_p12 = scmp.ne.s32.totalorder %s2941_s24, 4 }
 0x173   : > { %s2222_s6 = sld [smem:[#allocation10 + $0x1]] (!%p2221_p12) }
 0x174   : > { %962 = sbr.rel (%p2221_p12) target bundleno = 818 (0x332), region = 80  ;;  %s1002_s24 = sld [smem:[#allocation10]] (!%p2221_p12) }
 0x179   : > { %v3256_v48 = vld [vmem:[#allocation4] sm:$0xff]  ;;  %v2973_v49 = vmov 0   ;;  %v2630_v51 = vld [vmem:[#allocation15 + $0x78] sm:$0xff]   ;;  %v2632_v53 = vld [vmem:[#allocation15 + $0x70] sm:$0xff]   ;;  %v1007_v25 = vstv %s2222_s6 }
 0x17a   : > { %2628 = vset.pattern.permute.xlu0 %v2973_v49  ;;  %v964_v50 = vmax.f32 %v3256_v48, 1.0  ;;  %v2631_v52 = vld [vmem:[#allocation15 + $0x38] sm:$0xff]   ;;  %2629 = vset.pattern.permute.xlu1 %v2973_v49  ;;  %v2633_v54 = vld [vmem:[#allocation15 + $0x30] sm:$0xff]   ;;  %v2634_v55 = vld [vmem:[#allocation15 + $0x68] sm:$0xff]   ;;  %vm988_vm12 = vcmp.gt.f32.partialorder %v3256_v48, 0.0  ;;  %v1010_v28 = vstv %s1002_s24 }
 0x17b   : > { %2361 = vmatprep.subr.bf16.mxu0 %v2630_v51  ;;  %v2635_v56 = vld [vmem:[#allocation15 + $0x28] sm:$0xff]   ;;  %v2636_v57 = vld [vmem:[#allocation15 + $0x60] sm:$0xff]   ;;  %v2638_v59 = vld [vmem:[#allocation15 + $0x58] sm:$0xff]   ;;  %v990_v2 = vsel %vm988_vm12, 1, %v2973_v49 }
 0x17c   : > { %2726 = vrcp.f32 %v964_v50  ;;  %2362 = vmatpush3.bf16.msra.mxu0 %v2631_v52  ;;  %v2637_v58 = vld [vmem:[#allocation15 + $0x20] sm:$0xff]   ;;  %v2642_v60 = vld [vmem:[#allocation15 + $0xf8] sm:$0xff]   ;;  %v2640_v0 = vld [vmem:[#allocation15 + $0x50] sm:$0xff]   ;;  %v1004_v23 = vadd.f32 1.0, %v964_v50 }
 0x17d   : > { %2363 = vmatprep.subr.bf16.mxu0 %v2632_v53  ;;  %2383 = vmatprep.subr.bf16.mxu1 %v2642_v60  ;;  %v2644_v61 = vld [vmem:[#allocation15 + $0xb8] sm:$0xff]   ;;  %v2646_v1 = vld [vmem:[#allocation15 + $0xf0] sm:$0xff]   ;;  %v2643_v6 = vld [vmem:[#allocation15 + $0x48] sm:$0xff]  }
 0x17e   : > { %v2639_v63 = vld [vmem:[#allocation15 + $0x18] sm:$0xff]   ;;  %v2641_v3 = vld [vmem:[#allocation15 + $0x10] sm:$0xff]   ;;  %2384 = vmatpush3.bf16.msra.mxu1 %v2644_v61  ;;  %v2650_v7 = vld [vmem:[#allocation15 + $0xe8] sm:$0xff]   ;;  %2728 = vlog2.f32 %v1004_v23 }
 0x17f   : > { %2385 = vmatprep.subr.bf16.mxu1 %v2646_v1  ;;  %v2648_v5 = vld [vmem:[#allocation15 + $0xb0] sm:$0xff]   ;;  %v2651_v8 = vld [vmem:[#allocation15 + $0xa8] sm:$0xff]   ;;  %v2647_v11 = vld [vmem:[#allocation15 + $0x40] sm:$0xff]  }
 0x180   : > { %2364 = vmatpush3.bf16.msra.mxu0 %v2633_v54  ;;  %v2645_v9 = vld [vmem:[#allocation15 + $0x8] sm:$0xff]   ;;  %v2654_v12 = vld [vmem:[#allocation15 + $0xe0] sm:$0xff]   ;;  %v2652_v10 = vld [vmem:[#allocation14 + $0x78] sm:$0xff]  }
 0x181   : > { %2365 = vmatprep.subr.bf16.mxu0 %v2634_v55  ;;  %v2655_v13 = vld [vmem:[#allocation15 + $0xa0] sm:$0xff]   ;;  %v2658_v14 = vld [vmem:[#allocation15 + $0xd8] sm:$0xff]   ;;  %v2662_v16 = vld [vmem:[#allocation15 + $0xd0] sm:$0xff]  }
 0x182   : > { %2386 = vmatpush3.bf16.msra.mxu1 %v2648_v5  ;;  %v2649_v4 = vld [vmem:[#allocation15] sm:$0xff]   ;;  %v2659_v15 = vld [vmem:[#allocation15 + $0x98] sm:$0xff]   ;;  %v2663_v17 = vld [vmem:[#allocation15 + $0x90] sm:$0xff]  }
 0x183   : > { %2387 = vmatprep.subr.bf16.mxu1 %v2650_v7  ;;  %v2666_v18 = vld [vmem:[#allocation15 + $0xc8] sm:$0xff]   ;;  %v2670_v20 = vld [vmem:[#allocation15 + $0xc0] sm:$0xff]   ;;  %v2674_v22 = vld [vmem:[#allocation14 + $0xf8] sm:$0xff]  }
 0x184   : > { %2366 = vmatpush3.bf16.msra.mxu0 %v2635_v56  ;;  %v2667_v19 = vld [vmem:[#allocation15 + $0x88] sm:$0xff]   ;;  %v2671_v21 = vld [vmem:[#allocation15 + $0x80] sm:$0xff]   ;;  %v967_v31 = vld [vmem:[#allocation2] sm:$0xff] }
 0x185   : > { %2367 = vmatprep.subr.bf16.mxu0 %v2636_v57  ;;  %v974_v32 = vld [vmem:[#allocation3] sm:$0xff]  ;;  %v989_v34 = vld [vmem:[#allocation5] sm:$0xff]  ;;  %v2653_v41 = vld [vmem:[#allocation14 + $0x38] sm:$0xff]  }
 0x186   : > { %2388 = vmatpush3.bf16.msra.mxu1 %v2651_v8  ;;  %v3264_v38 = vpack.c.bf16 %v989_v34, %v989_v34  ;;  %v2656_v44 = vld [vmem:[#allocation14 + $0x70] sm:$0xff]   ;;  %v2660_v47 = vld [vmem:[#allocation14 + $0x68] sm:$0xff]   ;;  %v2664_v49 = vld [vmem:[#allocation14 + $0x60] sm:$0xff]  }
 0x187   : > { %2389 = vmatprep.subr.bf16.mxu1 %v2654_v12  ;;  %v2657_v46 = vld [vmem:[#allocation14 + $0x30] sm:$0xff]   ;;  %v2661_v48 = vld [vmem:[#allocation14 + $0x28] sm:$0xff]   ;;  %v2665_v50 = vld [vmem:[#allocation14 + $0x20] sm:$0xff]  }
 0x188   : > { %2368 = vmatpush3.bf16.msra.mxu0 %v2637_v58  ;;  %v2668_v51 = vld [vmem:[#allocation14 + $0x58] sm:$0xff]   ;;  %v2672_v54 = vld [vmem:[#allocation14 + $0x50] sm:$0xff]   ;;  %v2675_v61 = vld [vmem:[#allocation14 + $0x48] sm:$0xff]  }
 0x189   : > { %v2727_v62 = vpop.eup %2726  ;;  %2369 = vmatprep.subr.bf16.mxu0 %v2638_v59  ;;  %v2669_v52 = vld [vmem:[#allocation14 + $0x18] sm:$0xff]   ;;  %v2673_v58 = vld [vmem:[#allocation14 + $0x10] sm:$0xff]   ;;  %v2679_v5 = vld [vmem:[#allocation14 + $0x40] sm:$0xff]  }
 0x18a   : > { %970 = vperm.xlu0 %2628, %v2727_v62   ;;  %2390 = vmatpush3.bf16.msra.mxu1 %v2655_v13  ;;  %v996_v57 = vld [vmem:[#allocation6] sm:$0xff]  ;;  %v2681_v7 = vld [vmem:[#allocation14] sm:$0xff]   ;;  %v2682_v8 = vld [vmem:[#allocation14 + $0xe8] sm:$0xff]  }
 0x18b   : > { %2391 = vmatprep.subr.bf16.mxu1 %v2658_v14  ;;  %v2729_v24 = vpop.eup %2728  ;;  %v2685_v12 = vld [vmem:[#allocation17 + $0x38] sm:$0xff]   ;;  %v2686_v13 = vld [vmem:[#allocation14 + $0xe0] sm:$0xff]   ;;  %v2689_v14 = vld [vmem:[#allocation17 + $0x30] sm:$0xff]  }
 0x18c   : > { %2370 = vmatpush3.bf16.msra.mxu0 %v2639_v63  ;;  %v1006_v26 = vmul.f32 0.6931472, %v2729_v24  ;;  %v3281_v63 = vpack.c.bf16 %v996_v57, %v996_v57  ;;  %v2698_v23 = vld [vmem:[#allocation14 + $0xc8] sm:$0xff]   ;;  %v2700_v24 = vld [vmem:[#allocation17 + $0x58] sm:$0xff]  }
 0x18d   : > { %2371 = vmatprep.subr.bf16.mxu0 %v2640_v0  ;;  %v2676_v0 = vld [vmem:[#allocation14 + $0xb8] sm:$0xff]   ;;  %v2709_v34 = vld [vmem:[#allocation17 + $0x8] sm:$0xff]  }
 0x18e   : > { %992 = vperm.xlu0 %2628, %v990_v2   ;;  %2392 = vmatpush3.bf16.msra.mxu1 %v2659_v15  ;;  %v1008_v27 = vmul.f32 %v1007_v25, %v1006_v26  ;;  %2730 = vrcp.f32 %v1006_v26  ;;  %v2677_v2 = vld [vmem:[#allocation14 + $0x8] sm:$0xff]   ;;  %v2690_v15 = vld [vmem:[#allocation14 + $0xd8] sm:$0xff]  }
 0x18f   : > { %2393 = vmatprep.subr.bf16.mxu1 %v2662_v16  ;;  %v2692_v16 = vld [vmem:[#allocation17 + $0x68] sm:$0xff]   ;;  %v2701_v26 = vld [vmem:[#allocation17 + $0x18] sm:$0xff]  }
 0x190   : > { %2372 = vmatpush3.bf16.msra.mxu0 %v2641_v3  ;;  %1414 = vperm.xlu1 %2629, %v1008_v27   ;;  %v2678_v3 = vld [vmem:[#allocation14 + $0xf0] sm:$0xff]   ;;  %v2699_v25 = vld [vmem:[#allocation14 + $0x88] sm:$0xff]   ;;  %v2702_v27 = vld [vmem:[#allocation14 + $0xc0] sm:$0xff]  }
 0x191   : > { %2373 = vmatprep.subr.bf16.mxu0 %v2643_v6  ;;  %v2680_v6 = vld [vmem:[#allocation14 + $0xb0] sm:$0xff]  }
 0x192   : > { %2394 = vmatpush3.bf16.msra.mxu1 %v2663_v17  ;;  %v2691_v17 = vld [vmem:[#allocation14 + $0x98] sm:$0xff]  }
 0x193   : > { %2395 = vmatprep.subr.bf16.mxu1 %v2666_v18  ;;  %v2693_v18 = vld [vmem:[#allocation17 + $0x28] sm:$0xff]  }
 0x194   : > { %2374 = vmatpush3.bf16.msra.mxu0 %v2645_v9  ;;  %v2684_v9 = vld [vmem:[#allocation17 + $0x78] sm:$0xff]  }
 0x195   : > { %2375 = vmatprep.subr.bf16.mxu0 %v2647_v11  ;;  %v2683_v11 = vld [vmem:[#allocation14 + $0xa8] sm:$0xff]  }
 0x196   : > { %2396 = vmatpush3.bf16.msra.mxu1 %v2667_v19  ;;  %v2694_v19 = vld [vmem:[#allocation14 + $0xd0] sm:$0xff]  }
 0x197   : > { %2397 = vmatprep.subr.bf16.mxu1 %v2670_v20  ;;  %v2696_v20 = vld [vmem:[#allocation17 + $0x60] sm:$0xff]  }
 0x198   : > { %2376 = vmatpush3.bf16.msra.mxu0 %v2649_v4  ;;  %v2688_v4 = vld [vmem:[#allocation17 + $0x70] sm:$0xff]  }
 0x199   : > { %2405 = vmatprep.subr.bf16.mxu0 %v2652_v10  ;;  %v2687_v10 = vld [vmem:[#allocation14 + $0xa0] sm:$0xff]  }
 0x19a   : > { %2398 = vmatpush3.bf16.msra.mxu1 %v2671_v21  ;;  %v2695_v21 = vld [vmem:[#allocation14 + $0x90] sm:$0xff]  }
 0x19b   : > { %2427 = vmatprep.subr.bf16.mxu1 %v2674_v22  ;;  %v2731_v29 = vpop.eup %2730  ;;  %v2697_v22 = vld [vmem:[#allocation17 + $0x20] sm:$0xff]  }
 0x19c   : > { %v1011_v30 = vmul.f32 %v2731_v29, %v1010_v28  ;;  %v2704_v28 = vld [vmem:[#allocation17 + $0x50] sm:$0xff]   ;;  %v2703_v29 = vld [vmem:[#allocation14 + $0x80] sm:$0xff]  }
 0x19e   : > { %2028 = vperm.xlu1 %2629, %v1011_v30   ;;  %v2705_v30 = vld [vmem:[#allocation17 + $0x10] sm:$0xff]  }
 0x205   : > { %v971_v33 = vpop.permute.xlu0 %970 }
 0x206   : > { %v973_v35 = vmul.f32 %v971_v33, %v967_v31  ;;  %v975_v36 = vmul.f32 %v974_v32, %v971_v33  ;;  %v2706_v31 = vld [vmem:[#allocation17 + $0xf8] sm:$0xff]   ;;  %v2707_v32 = vld [vmem:[#allocation17 + $0x48] sm:$0xff]  }
 0x207   : > { %v2708_v33 = vld [vmem:[#allocation17 + $0xb8] sm:$0xff]  }
 0x208   : > { %v976_v37 = vmul.f32 %v973_v35, %v973_v35  ;;  %v3266_v42 = vpack.c.bf16 %v973_v35, %v973_v35  ;;  %v2710_v35 = vld [vmem:[#allocation17 + $0xf0] sm:$0xff]  }
 0x209   : > { %v993_v39 = vpop.permute.xlu0 %992 }
 0x20a   : > { %v977_v40 = vsub.f32 %v975_v36, %v976_v37  ;;  %vm994_vm13 = vcmp.eq.s32.totalorder %v993_v39, 1  ;;  %v2711_v36 = vld [vmem:[#allocation17 + $0x40] sm:$0xff]   ;;  %v2712_v37 = vld [vmem:[#allocation17 + $0xb0] sm:$0xff]   ;;  %v2714_v39 = vld [vmem:[#allocation17 + $0xe8] sm:$0xff]  }
 0x20b   : > { %vm3268_vm14 = vmpackc.low %vm994_vm13, %vm994_vm13 }
 0x20c   : > { %v978_v45 = vmax.f32 %v977_v40, 1e-05  ;;  %2257 = vmatprep.mubr.msk.bf16.mxu0 %vm3268_vm14, %v3264_v38  ;;  %v2715_v40 = vld [vmem:[#allocation17 + $0xa8] sm:$0xff]  }
 0x20d   : > { %1365 = vmatmul.mubr.bf16.vlgmr.msra.gmra.mxu0 %v3266_v42 }
 0x20e   : > { %2732 = vrsqrt.f32 %v978_v45  ;;  %2406 = vmatpush3.bf16.msra.mxu0 %v2653_v41  ;;  %2300 = vmatprep.mubr.msk.bf16.mxu0 %vm3268_vm14, %v3264_v38  ;;  %vm981_vm15 = vcmp.eq.f32.partialorder %v978_v45, inf  ;;  %v984_v56 = vand.u32 2147483648, %v978_v45  ;;  %vm983_vm0 = vcmp.eq.f32.partialorder %v978_v45, 0.0  ;;  %v2716_v41 = vld [vmem:[#allocation17 + $0xe0] sm:$0xff]  }
 0x20f   : > { %2407 = vmatprep.subr.bf16.mxu0 %v2656_v44  ;;  %v2717_v44 = vld [vmem:[#allocation17 + $0xa0] sm:$0xff]  }
 0x212   : > { %2408 = vmatpush3.bf16.msra.mxu0 %v2657_v46  ;;  %v2719_v46 = vld [vmem:[#allocation17 + $0x98] sm:$0xff]  }
 0x213   : > { %2409 = vmatprep.subr.bf16.mxu0 %v2660_v47  ;;  %v2720_v47 = vld [vmem:[#allocation17 + $0xd0] sm:$0xff]  }
 0x216   : > { %2410 = vmatpush3.bf16.msra.mxu0 %v2661_v48  ;;  %v2721_v48 = vld [vmem:[#allocation17 + $0x90] sm:$0xff]  }
 0x217   : > { %2411 = vmatprep.subr.bf16.mxu0 %v2664_v49  ;;  %v2722_v49 = vld [vmem:[#allocation17 + $0xc8] sm:$0xff]  }
 0x21a   : > { %2412 = vmatpush3.bf16.msra.mxu0 %v2665_v50  ;;  %v2723_v50 = vld [vmem:[#allocation17 + $0x88] sm:$0xff]  }
 0x21b   : > { %v2733_v53 = vpop.eup %2732  ;;  %2413 = vmatprep.subr.bf16.mxu0 %v2668_v51  ;;  %v2724_v51 = vld [vmem:[#allocation17 + $0xc0] sm:$0xff]  }
 0x21c   : > { %v980_v55 = vmul.f32 %v2733_v53, %v978_v45 }
 0x21e   : > { %2414 = vmatpush3.bf16.msra.mxu0 %v2669_v52  ;;  %v982_v59 = vsel %vm981_vm15, %v978_v45, %v980_v55  ;;  %v2718_v45 = vld [vmem:[#allocation17 + $0xd8] sm:$0xff]   ;;  %v2725_v52 = vld [vmem:[#allocation17 + $0x80] sm:$0xff]  }
 0x21f   : > { %2415 = vmatprep.subr.bf16.mxu0 %v2672_v54  ;;  %v985_v60 = vsel %vm983_vm0, %v984_v56, %v982_v59 }
 0x220   : > { %vm986_vm1 = vcmp.le.f32.partialorder %v985_v60, 0.0031622776  ;;  %v3279_v62 = vpack.c.bf16 %v985_v60, %v985_v60 }
 0x221   : > { %vm2258_vm2 = vmneg %vm986_vm1 }
 0x222   : > { %2416 = vmatpush3.bf16.msra.mxu0 %v2673_v58  ;;  %vm3283_vm3 = vmpackc.low %vm2258_vm2, %vm2258_vm2 }
 0x223   : > { %2262 = vmatprep.mubr.msk.bf16.mxu1 %vm3283_vm3, %v3279_v62  ;;  %2417 = vmatprep.subr.bf16.mxu0 %v2675_v61 }
 0x224   : > { %2265 = vmatmul.mubr.msk.bf16.vlgmr.msra.gmra.mxu1 %vm3268_vm14, %v3281_v63 }
 0x225   : > { %2428 = vmatpush3.bf16.msra.mxu1 %v2676_v0  ;;  %2305 = vmatprep.mubr.msk.bf16.mxu1 %vm3283_vm3, %v3279_v62 }
 0x226   : > { %2418 = vmatpush3.bf16.msra.mxu0 %v2677_v2  ;;  %2429 = vmatprep.subr.bf16.mxu1 %v2678_v3 }
 0x227   : > { %2419 = vmatprep.subr.bf16.mxu0 %v2679_v5 }
 0x229   : > { %2430 = vmatpush3.bf16.msra.mxu1 %v2680_v6 }
 0x22a   : > { %2420 = vmatpush3.bf16.msra.mxu0 %v2681_v7  ;;  %2431 = vmatprep.subr.bf16.mxu1 %v2682_v8 }
 0x22b   : > { %2449 = vmatprep.subr.bf16.mxu0 %v2684_v9 }
 0x22d   : > { %1643 = vmatmul.mubr.bf16.vlgmr.msra.gmra.mxu0 %v3266_v42  ;;  %2432 = vmatpush3.bf16.msra.mxu1 %v2683_v11 }
 0x22e   : > { %2450 = vmatpush3.bf16.msra.mxu0 %v2685_v12  ;;  %2343 = vmatprep.mubr.msk.bf16.mxu0 %vm3268_vm14, %v3264_v38  ;;  %v2713_v38 = vld [vmem:[#allocation17] sm:$0xff]   ;;  %v1415_v12 = vpop.permute.xlu1 %1414 }
 0x22f   : > { %2433 = vmatprep.subr.bf16.mxu1 %v2686_v13  ;;  %2451 = vmatprep.subr.bf16.mxu0 %v2688_v4 }
 0x231   : > { %2434 = vmatpush3.bf16.msra.mxu1 %v2687_v10 }
 0x232   : > { %2452 = vmatpush3.bf16.msra.mxu0 %v2689_v14  ;;  %2435 = vmatprep.subr.bf16.mxu1 %v2690_v15 }
 0x233   : > { %2453 = vmatprep.subr.bf16.mxu0 %v2692_v16 }
 0x235   : > { %2436 = vmatpush3.bf16.msra.mxu1 %v2691_v17 }
 0x236   : > { %2454 = vmatpush3.bf16.msra.mxu0 %v2693_v18  ;;  %2437 = vmatprep.subr.bf16.mxu1 %v2694_v19 }
 0x237   : > { %2455 = vmatprep.subr.bf16.mxu0 %v2696_v20 }
 0x239   : > { %2438 = vmatpush3.bf16.msra.mxu1 %v2695_v21  ;;  %v2029_v21 = vpop.permute.xlu1 %2028 }
 0x23a   : > { %2456 = vmatpush3.bf16.msra.mxu0 %v2697_v22  ;;  %2439 = vmatprep.subr.bf16.mxu1 %v2698_v23 }
 0x23b   : > { %2457 = vmatprep.subr.bf16.mxu0 %v2700_v24 }
 0x23d   : > { %2440 = vmatpush3.bf16.msra.mxu1 %v2699_v25  ;;  %v2352_v25 = vld [vmem:[%s3371_s9] ss:$0 sm:$0xff] }
 0x23e   : > { %2458 = vmatpush3.bf16.msra.mxu0 %v2701_v26  ;;  %2441 = vmatprep.subr.bf16.mxu1 %v2702_v27 }
 0x23f   : > { %2459 = vmatprep.subr.bf16.mxu0 %v2704_v28 }
 0x241   : > { %2442 = vmatpush3.bf16.msra.mxu1 %v2703_v29 }
 0x242   : > { %2460 = vmatpush3.bf16.msra.mxu0 %v2705_v30  ;;  %2471 = vmatprep.subr.bf16.mxu1 %v2706_v31 }
 0x243   : > { %2461 = vmatprep.subr.bf16.mxu0 %v2707_v32 }
 0x244   : > { %2308 = vmatmul.mubr.msk.bf16.vlgmr.msra.gmra.mxu1 %vm3268_vm14, %v3281_v63 }
 0x245   : > { %2472 = vmatpush3.bf16.msra.mxu1 %v2708_v33  ;;  %2348 = vmatprep.mubr.msk.bf16.mxu1 %vm3283_vm3, %v3279_v62 }
 0x246   : > { %2462 = vmatpush3.bf16.msra.mxu0 %v2709_v34  ;;  %2473 = vmatprep.subr.bf16.mxu1 %v2710_v35 }
 0x247   : > { %2463 = vmatprep.subr.bf16.mxu0 %v2711_v36 }
 0x249   : > { %2474 = vmatpush3.bf16.msra.mxu1 %v2712_v37 }
 0x24a   : > { %2464 = vmatpush3.bf16.msra.mxu0 %v2713_v38  ;;  %2475 = vmatprep.subr.bf16.mxu1 %v2714_v39 }
 0x24d   : > { %1979 = vmatmul.mubr.bf16.vlgmr.msra.gmra.mxu0 %v3266_v42  ;;  %2476 = vmatpush3.bf16.msra.mxu1 %v2715_v40 }
 0x24e   : > { %2477 = vmatprep.subr.bf16.mxu1 %v2716_v41 }
 0x251   : > { %2478 = vmatpush3.bf16.msra.mxu1 %v2717_v44 }
 0x252   : > { %2479 = vmatprep.subr.bf16.mxu1 %v2718_v45 }
 0x255   : > { %2480 = vmatpush3.bf16.msra.mxu1 %v2719_v46 }
 0x256   : > { %2481 = vmatprep.subr.bf16.mxu1 %v2720_v47 }
 0x259   : > { %2482 = vmatpush3.bf16.msra.mxu1 %v2721_v48 }
 0x25a   : > { %2483 = vmatprep.subr.bf16.mxu1 %v2722_v49 }
 0x25d   : > { %2484 = vmatpush3.bf16.msra.mxu1 %v2723_v50 }
 0x25e   : > { %2485 = vmatprep.subr.bf16.mxu1 %v2724_v51 }
 0x261   : > { %2486 = vmatpush3.bf16.msra.mxu1 %v2725_v52 }
 0x264   : > { %2351 = vmatmul.mubr.msk.bf16.vlgmr.msra.gmra.mxu1 %vm3268_vm14, %v3281_v63 }
 0x2cd   : > { %v2377_v42 = vpop.f32.mrf.mxu0 }
 0x2cf   : > { %v2378_v53 = vpop.f32.mrf.mxu0 }
 0x2d0   : > { %v2379_v54 = vadd.f32 %v2378_v53, %v2377_v42 }
 0x2d1   : > { %v2380_v55 = vpop.f32.mrf.mxu0 }
 0x2d3   : > { %v2381_v56 = vpop.f32.mrf.mxu0 }
 0x2e4   : > { %v2399_v57 = vpop.f32.mrf.mxu1 }
 0x2e6   : > { %v2400_v58 = vpop.f32.mrf.mxu1 }
 0x2e7   : > { %v2401_v9 = vadd.f32 %v2400_v58, %v2399_v57 }
 0x2e8   : > { %v2402_v59 = vpop.f32.mrf.mxu1 }
 0x2e9   : > { %v1407_v11 = vadd.f32 %v2401_v9, %v2379_v54 }
 0x2ea   : > { %v2403_v60 = vpop.f32.mrf.mxu1 }
 0x2eb   : > { %v1417_v14 = vmul.f32 %v1415_v12, %v1407_v11 }
 0x2ed   : > { %v2421_v61 = vpop.f32.mrf.mxu0 }
 0x2ef   : > { %v2422_v62 = vpop.f32.mrf.mxu0 }
 0x2f0   : > { %v2423_v4 = vadd.f32 %v2422_v62, %v2421_v61 }
 0x2f1   : > { %v2424_v0 = vpop.f32.mrf.mxu0 }
 0x2f2   : > { %v1645_v19 = vadd.f32 %v2423_v4, %v1417_v14 }
 0x2f3   : > { %v2425_v1 = vpop.f32.mrf.mxu0 }
 0x304   : > { %v2443_v2 = vpop.f32.mrf.mxu1 }
 0x306   : > { %v2444_v3 = vpop.f32.mrf.mxu1 }
 0x307   : > { %v2445_v15 = vadd.f32 %v2444_v3, %v2443_v2 }
 0x308   : > { %v2446_v5 = vpop.f32.mrf.mxu1 }
 0x309   : > { %v1685_v23 = vadd.f32 %v2445_v15, %v1645_v19 }
 0x30a   : > { %v2447_v6 = vpop.f32.mrf.mxu1 }
 0x30d   : > { %v2465_v7 = vpop.f32.mrf.mxu0 }
 0x30f   : > { %v2466_v43 = vpop.f32.mrf.mxu0 }
 0x310   : > { %v2467_v16 = vadd.f32 %v2466_v43, %v2465_v7 }
 0x311   : > { %v2468_v63 = vpop.f32.mrf.mxu0 }
 0x313   : > { %v2469_v8 = vpop.f32.mrf.mxu0 }
 0x324   : > { %v2487_v13 = vpop.f32.mrf.mxu1 }
 0x326   : > { %v2488_v10 = vpop.f32.mrf.mxu1 }
 0x327   : > { %v2489_v17 = vadd.f32 %v2488_v10, %v2487_v13 }
 0x328   : > { %v2490_v18 = vpop.f32.mrf.mxu1 }
 0x329   : > { %v2021_v20 = vadd.f32 %v2489_v17, %v2467_v16 }
 0x32a   : > { %v2491_v22 = vpop.f32.mrf.mxu1 }
 0x32b   : > { %v2031_v24 = vmul.f32 %v2029_v21, %v2021_v20 }
 0x32d   : > { %v2032_v26 = vadd.f32 %v2031_v24, %v1685_v23 }
 0x32f   : > { %v2040_v27 = vadd.f32 %v2352_v25, %v2032_v26 }
 0x331   : > { %2041 = vst [vmem:[%s522_s2] sm:$0xff] %v2040_v27 }
 0x332 PF: > { %s2354_s20 = sshll.u32 %s2945_s25, 7  ;;  %s2056_s17 = sshll.u32 %s522_s2, 4  ;;  %s2057_s17 = int_to_ptr.vmem [resolvable:$true] %s2056_s17 }
 0x333   : > { %s2054_s18 = scalar_lea.hbm %s3372_s10, %s2354_s20  ;;  %s3400_s30 = sand.u32 1, %s2933_s22  }
 0x334   : > { %s2043_s21 = scalar_lea.sflag [#allocation12], %s3400_s30  ;;  %s2851_s26 = scalar_lea.vmem %s2057_s17, 128 }
 0x335   : > { %p2852_p1 = scmp.ne.s32.totalorder %s2057_s17, %s2851_s26  ;;  %s2974_s12 = smov [#allocation18]  }
 0x336   : > { %s2855_s7 = sshll.u32 %s2974_s12, 4  ;;  %s2856_s7 = int_to_ptr.vmem [resolvable:$false] %s2855_s7 }
 0x337   : > { %p2853_p6 = pnand %p2852_p1, %p3086_p13  ;;  %s2857_s8 = scalar_lea.vmem %s2856_s7, 256 }
 0x338   : > { %p2858_p10 = scmp.lt.s32.totalorder %s2057_s17, %s2856_s7  ;;  %p2859_p11 = scmp.lt.s32.totalorder %s2857_s8, %s2851_s26 }
 0x339   : > { %p2854_p9 = pneg %p2853_p6 }
 0x33a   : > { %p2860_p0 = por %p2859_p11, %p2858_p10 }
 0x33c   : > { %p2861_p2 = pnand %p2860_p0, %p2854_p9 }
 0x33e   : > { %2864 = shalt.err (!%p2861_p2)
}
 0x33f   : > { %s2865_s25 = scalar_lea.hbm %s2054_s18, 128  ;;  %s2869_s16 = scalar_lea.hbm %s3372_s10, 256 }
 0x340   : > { %p2866_p3 = scmp.ne.s32.totalorder %s2054_s18, %s2865_s25  ;;  %p2870_p5 = scmp.lt.s32.totalorder %s2054_s18, %s3372_s10 }
 0x341   : > { %p2871_p8 = scmp.lt.s32.totalorder %s2869_s16, %s2865_s25 }
 0x342   : > { %p2867_p4 = pnand %p2866_p3, %p3086_p13 }
 0x343   : > { %p2872_p12 = por %p2871_p8, %p2870_p5 }
 0x344   : > { %p2868_p7 = pneg %p2867_p4 }
 0x346   : > { %p2873_p1 = pnand %p2872_p12, %p2868_p7 }
 0x348   : > { %2876 = shalt.err (!%p2873_p1)
}
 0x349   : > { %2519 = dma.vmem_to_hbm [thread:$0]  (%p3086_p13), %s2057_s17, 128, %s2054_s18, %s2043_s21  }
 0x34a PF: > { %p2546_p6 = scmp.ge.s32.totalorder %s2957_s28, 2  ;;  %s2068_s24 = sand.u32 1, %s2929_s1  }
 0x34b   : > { %p3401_p9 = scmp.ne.s32.totalorder %s3387_s15, 0  ;;  %s2069_s19 = scalar_lea.sflag [#allocation12], %s2068_s24 }
 0x34d   : > { %p2535_p10 = pnand %p2546_p6, %p3401_p9 }
 0x34f   : > { %p2536_p11 = pneg %p2535_p10 }
 0x351   : > { %2924 = dma.done.wait (%p2536_p11), %s2069_s19, 128  }
 0x352   : > { %2926 = vsyncadd (%p2536_p11), %s2069_s19, 4294967168  ;;  %s36_s28 = sadd.s32 1, %s2957_s28   ;;  %s3402_s0 = sld [smem:[#allocation28_spill]] }
 0x353   : > { %p33_p0 = scmp.ge.s32.totalorder %s36_s28, 12   ;;  %s3403_s24 = sld [smem:[#allocation24_spill]] }
 0x354   : > { %s3404_s25 = sld [smem:[#allocation25_spill]]  ;;  %s3407_s1 = smov %s2933_s22 }
 0x355   : > { %s3405_s26 = sld [smem:[#allocation26_spill]]  ;;  %s3408_s22 = smov %s2937_s23 }
 0x356   : > { %s3406_s27 = sld [smem:[#allocation27_spill]]  ;;  %35 = sbr.rel (!%p33_p0) target bundleno = 35 (0x23), region = 123 }
 0x358   : > { %s3409_s23 = smov %s3402_s0 }
 0x35b   :  { %2074 = vsyncpa [#allocation11], 1 }
 0x35c   :  { %2076 = vsyncpa [#allocation11 + $0x1], 1 }
 0x35d   :  { %2077 = vsyncpa [#allocation16], 1 }
 0x35e   :  { %2078 = vsyncpa [#allocation12], 1 }
 0x35f   :  { %2080 = vsyncpa [#allocation12 + $0x1], 1 }
 0x360   :  { %2081 = vsyncpa [#allocation13], 1 }
 0x361   :  { %2083 = vsyncpa [#allocation13 + $0x1], 1 }

</bundles_post_ra>
